<compile_context>
chip_gen: v7x
topology: tpu7x:2x2x1
jax: 0.10.0
libtpu: 0.0.40
codegen_flags: <defaults>
</compile_context>

<pallas_src>
import math
import functools

import jax
import jax.numpy as jnp
from jax import lax
from jax.experimental import pallas as pl
from jax.experimental.pallas import tpu as pltpu


def _ceil_to(x, m):
    return ((x + m - 1) // m) * m


# ----------------------------------------------------------------------------
# Kernel 1: MLP head  p = sigmoid(MLP(delta))   (row-tiled 1-D grid)
# ----------------------------------------------------------------------------
# TODO(synk): `LinearBlock` is not defined in the reference source; it is
# assumed to be Linear -> ReLU (no normalization layer).
def _mlp_kernel(delta_ref, w1_ref, b1_ref, w2_ref, b2_ref, w3r_ref, b3_ref,
                p_ref):
    x = delta_ref[...]                                               # [bm, D]
    h = jnp.dot(x, w1_ref[...], preferred_element_type=jnp.float32) + b1_ref[...]
    h = jnp.maximum(h, 0.0)
    h = jnp.dot(h, w2_ref[...], preferred_element_type=jnp.float32) + b2_ref[...]
    h = jnp.maximum(h, 0.0)
    # Final [*, H2] @ [H2, 1] layer as a VPU multiply + lane reduction instead
    # of a wasteful 1-lane-wide MXU matmul.  w3r is the weight as [1, H2].
    z = jnp.sum(h * w3r_ref[...], axis=1, keepdims=True) + b3_ref[...]  # [bm,1]
    p_ref[...] = 1.0 / (1.0 + jnp.exp(-z))


# ----------------------------------------------------------------------------
# Kernel 2: tiled loss  loss = -sum(k * gamma) over the [N, N] plane
# ----------------------------------------------------------------------------
def _loss_kernel(mn_ref, p_col_ref, p_row_ref, di_ref, djT_ref, out_ref,
                 acc_ref, w_ref, z_ref):
    i = pl.program_id(0)
    j = pl.program_id(1)

    @pl.when(j == 0)
    def _init():
        acc_ref[...] = jnp.zeros_like(acc_ref)
        # gamma denominator, algebraically simplified.  With
        #   A = m(m-1) - 2mn + n(n-1),   B = mn - n(n-1)
        # the reference denominator
        #   m(m-1) p_i p_j - mn(p_i-1)p_j - mn p_i(p_j-1) + n(n-1)(p_i-1)(p_j-1)
        # equals  (A p_i + B) p_j + (B p_i + n(n-1))  =  w_i * p_j + z_i.
        # w_i, z_i depend only on the row tile -> hoisted out of the j loop.
        m = mn_ref[0]
        n = mn_ref[1]
        a = m * (m - 1.0) - 2.0 * m * n + n * (n - 1.0)
        b = m * n - n * (n - 1.0)
        p_i = p_col_ref[...]                               # [t, 1]
        w_ref[...] = a * p_i + b
        z_ref[...] = b * p_i + n * (n - 1.0)

    # k * gamma is symmetric under i <-> j (k is a Gram matrix and gamma's
    # numerator/denominator are symmetric in p_i, p_j), so only tiles with
    # j >= i are computed; off-diagonal tiles are weighted by 2.
    @pl.when(j >= i)
    def _compute():
        p_i = p_col_ref[...]                               # [t, 1]
        p_j = p_row_ref[...]                               # [1, t]
        # bf16 operands (cast once in the wrapper), f32 MXU accumulation,
        # native [M,K]@[K,N] orientation (col operand is lane-dense delta_T).
        k = lax.dot_general(di_ref[...], djT_ref[...],
                            (((1,), (0,)), ((), ())),
                            preferred_element_type=jnp.float32)   # [t, t]
        denom = w_ref[...] * p_j + z_ref[...]              # [t, t]
        # cof = (pi p_i)(pi p_j)/pi^2 == p_i p_j ; EUP approximate reciprocal
        # keeps the divide off the VALU slots of the N^2 hot path.
        gamma = (p_i * p_j) * pl.reciprocal(denom, approx=True)
        wt = jnp.where(i == j, 1.0, 2.0)
        acc_ref[...] += wt * (k * gamma)

    @pl.when(j == pl.num_programs(1) - 1)
    def _finalize():
        out_ref[...] = jnp.full((1, 8, 128), jnp.sum(acc_ref[...]), jnp.float32)


# ----------------------------------------------------------------------------
# Wrapper helpers
# ----------------------------------------------------------------------------
def _pick_divisor(n, candidates):
    for c in candidates:
        if 0 < c <= n and n % c == 0:
            return c
    return n


def _pick_square_tile(n):
    # Prefer large 128-multiple tiles; keep num_tiles >= 2 (and even when
    # possible) so the "parallel" row axis balances across v7x's 2 TensorCores.
    best = None
    for t in (512, 256, 128):
        if n % t == 0 and n // t >= 2:
            if (n // t) % 2 == 0:
                return t
            if best is None:
                best = t
    if best is not None:
        return best
    # TODO(synk): for N not a multiple of 128, padding N (with p/m/n computed
    # over true rows) would avoid these sub-128 fallback tiles.
    for t in (512, 256, 128, 64, 32, 16, 8):
        if t <= n and n % t == 0:
            return t
    return n


def _mlp_vmem_bytes(bm, d, h1, h2):
    f32 = 4
    b = 2 * bm * _ceil_to(d, 128) * f32               # delta blocks (x2 buf)
    b += bm * _ceil_to(h1, 128) * f32                 # h1
    b += bm * _ceil_to(h2, 128) * f32                 # h2
    b += 2 * bm * 128 * f32                           # p out blocks (lane pad)
    b += (_ceil_to(d, 8) * _ceil_to(h1, 128)
          + _ceil_to(h1, 8) * _ceil_to(h2, 128)
          + 4 * 8 * _ceil_to(h2, 128)) * f32          # resident weights/biases
    return b


def _loss_vmem_bytes(t, d):
    f32, bf16 = 4, 2
    b = 2 * t * 128 * f32                             # p col blocks (lane pad)
    b += 2 * 8 * t * f32                              # p row blocks
    b += 2 * t * _ceil_to(d, 128) * bf16              # delta row tiles
    b += 2 * _ceil_to(d, 8) * t * bf16                # delta_T col tiles
    b += 2 * 8 * 128 * f32                            # out blocks
    b += t * t * f32                                  # acc scratch
    b += 2 * t * 128 * f32                            # w, z scratches
    return b


# ----------------------------------------------------------------------------
# Forward
# ----------------------------------------------------------------------------
@functools.partial(jax.jit, static_argnames=("ratio", "tile", "mlp_bm"))
def scorer_forward(delta, w1, b1, w2, b2, w3, b3, ratio=None, tile=None,
                   mlp_bm=None):
    N, D = delta.shape
    H1 = w1.shape[1]
    H2 = w2.shape[1]

    # ---- p = self.pred(delta): row-tiled MLP head ---------------------------
    bm = mlp_bm or _pick_divisor(N, (2048, 1024, 512, 256, 128, 64, 32, 16, 8))
    w3_row = w3.reshape(1, H2)                  # [1, H2] for VPU reduction
    p = pl.pallas_call(
        _mlp_kernel,
        out_shape=jax.ShapeDtypeStruct((N, 1), jnp.float32),
        grid_spec=pltpu.PrefetchScalarGridSpec(
            num_scalar_prefetch=0,
            grid=(N // bm,),
            in_specs=[
                pl.BlockSpec((bm, D), lambda i: (i, 0)),    # delta rows
                pl.BlockSpec((D, H1), lambda i: (0, 0)),    # resident weights
                pl.BlockSpec((1, H1), lambda i: (0, 0)),
                pl.BlockSpec((H1, H2), lambda i: (0, 0)),
                pl.BlockSpec((1, H2), lambda i: (0, 0)),
                pl.BlockSpec((1, H2), lambda i: (0, 0)),
                pl.BlockSpec((1, 1), lambda i: (0, 0)),
            ],
            out_specs=pl.BlockSpec((bm, 1), lambda i: (i, 0)),
        ),
        compiler_params=pltpu.CompilerParams(
            dimension_semantics=("parallel",),
            vmem_limit_bytes=int(min(2 * _mlp_vmem_bytes(bm, D, H1, H2)
                                     + (8 << 20), 40 << 20)),
        ),
    )(delta, w1, b1, w2, b2, w3_row, b3)

    # ---- _est_m_n: scalars computed BEFORE the tiled loss pass --------------
    if ratio is None:
        n_scalar = jnp.sum(p).astype(jnp.float32)
    else:
        n_scalar = jnp.asarray(float(int(N * ratio)), jnp.float32)
    m_scalar = jnp.asarray(N, jnp.float32) - n_scalar
    mn = jnp.stack([m_scalar, n_scalar])        # [m, n] -> SMEM

    # ---- tiled loss over the [N, N] plane ------------------------------------
    t = tile or _pick_square_tile(N)
    assert N % t == 0, f"tile {t} must divide N={N}"
    num_t = N // t

    delta_bf = delta.astype(jnp.bfloat16)       # bf16 MXU operands, cast once
    deltaT_bf = delta_bf.T                      # [D, N] lane-dense RHS
    p_row = p.reshape(1, N)                     # lane-dense copy of p

    tiles_computed = num_t * (num_t + 1) // 2   # symmetry: j >= i only
    elems = tiles_computed * t * t
    cost = pl.CostEstimate(
        flops=int(2 * D * elems + 8 * elems),
        transcendentals=int(elems),
        bytes_accessed=int(
            2 * N * D                    # row tiles (bf16), once per row strip
            + 2 * N * D * num_t          # col tiles (bf16), re-fetched per step
            + 4 * N                      # p column blocks
            + 4 * N * num_t              # p row blocks, re-fetched per step
            + 4 * num_t * 8 * 128 + 8),
    )

    smem = pl.BlockSpec(memory_space=pltpu.MemorySpace.SMEM)
    parts = pl.pallas_call(
        _loss_kernel,
        out_shape=jax.ShapeDtypeStruct((num_t, 8, 128), jnp.float32),
        grid_spec=pltpu.PrefetchScalarGridSpec(
            num_scalar_prefetch=0,
            grid=(num_t, num_t),
            in_specs=[
                smem,                                           # [m, n]
                pl.BlockSpec((t, 1), lambda i, j: (i, 0)),      # p rows
                pl.BlockSpec((1, t), lambda i, j: (0, j)),      # p cols
                pl.BlockSpec((t, D), lambda i, j: (i, 0)),      # delta row tile
                pl.BlockSpec((D, t), lambda i, j: (0, j)),      # delta_T col tile
            ],
            out_specs=pl.BlockSpec((1, 8, 128), lambda i, j: (i, 0, 0)),
            scratch_shapes=[
                pltpu.VMEM((t, t), jnp.float32),                # accumulator
                pltpu.VMEM((t, 1), jnp.float32),                # w_i (hoisted)
                pltpu.VMEM((t, 1), jnp.float32),                # z_i (hoisted)
            ],
        ),
        compiler_params=pltpu.CompilerParams(
            dimension_semantics=("parallel", "arbitrary"),
            vmem_limit_bytes=int(min(2 * _loss_vmem_bytes(t, D) + (12 << 20),
                                     40 << 20)),
        ),
        cost_estimate=cost,
    )(mn, p, p_row, delta_bf, deltaT_bf)

    loss = -jnp.sum(parts[:, 0, 0])
    return p, loss


# ----------------------------------------------------------------------------
# Deterministic parameter init (xavier_normal_ on weights, as in _init_weights)
# ----------------------------------------------------------------------------
def _xavier_normal(key, fan_in, fan_out):
    std = math.sqrt(2.0 / (fan_in + fan_out))
    return jax.random.normal(key, (fan_in, fan_out), jnp.float32) * std


def _bias(key, fan_in, fan_out):
    bound = 1.0 / math.sqrt(fan_in)
    return jax.random.uniform(key, (1, fan_out), jnp.float32, -bound, bound)


def init_scorer_params(key, in_dim, hidden_dim):
    dims = [in_dim] + hidden_dim + [1]
    keys = jax.random.split(key, 2 * (len(dims) - 1))
    params = []
    for i, (d1, d2) in enumerate(zip(dims[:-1], dims[1:])):
        params.append(_xavier_normal(keys[2 * i], d1, d2))
        params.append(_bias(keys[2 * i + 1], d1, d2))
    return params  # [w1, b1, w2, b2, w3, b3]


# ----------------------------------------------------------------------------
# Pure-JAX reference (same math as the PyTorch module) for a sanity check
# ----------------------------------------------------------------------------
def scorer_ref(delta, w1, b1, w2, b2, w3, b3, ratio):
    hp = jax.lax.Precision.HIGHEST
    h1 = jnp.maximum(jnp.dot(delta, w1, precision=hp) + b1, 0.0)
    h2 = jnp.maximum(jnp.dot(h1, w2, precision=hp) + b2, 0.0)
    z = jnp.dot(h2, w3, precision=hp) + b3
    p = 1.0 / (1.0 + jnp.exp(-z))
    num = delta.shape[0]
    if ratio is None:
        n = jnp.sum(p)
    else:
        n = int(num * ratio)
    m = num - n
    pi = math.pi
    cof = jnp.dot(pi * p, (pi * p).T, precision=hp) / (pi * pi)
    term1 = m * (m - 1) * jnp.dot(p, p.T, precision=hp)
    term2 = m * n * jnp.dot(p - 1.0, p.T, precision=hp)
    term3 = m * n * jnp.dot(p, (p - 1.0).T, precision=hp)
    term4 = n * (n - 1) * jnp.dot(p - 1.0, (p - 1.0).T, precision=hp)
    gamma = cof / (term1 - term2 - term3 + term4)
    k = jnp.dot(delta, delta.T, precision=hp)
    return p, -jnp.sum(k * gamma)


# ----------------------------------------------------------------------------
if __name__ == "__main__":
    N, in_dim = 256, 32
    hidden_dim = [64, 32]

    key = jax.random.PRNGKey(0)
    k_delta, k_params = jax.random.split(key)
    delta = jax.random.normal(k_delta, (N, in_dim), jnp.float32)
    w1, b1, w2, b2, w3, b3 = init_scorer_params(k_params, in_dim, hidden_dim)

    # Small tiles so the test exercises a real (2, 2) grid with accumulation,
    # the symmetry skip of tile (1, 0), and a 2-step MLP grid.
    for ratio in (0.25, None):
        p, loss = scorer_forward(delta, w1, b1, w2, b2, w3, b3,
                                 ratio=ratio, tile=128, mlp_bm=128)
        p = jax.block_until_ready(p)
        loss = jax.block_until_ready(loss)

        p_ref, loss_ref = scorer_ref(delta, w1, b1, w2, b2, w3, b3, ratio)
        assert jnp.allclose(p, p_ref, rtol=1e-3, atol=1e-5), \
            f"p mismatch (ratio={ratio})"
        # Loss tolerance covers bf16 matmul operands, EUP approx reciprocal
        # and tiled summation order vs the full-precision reference.
        assert jnp.allclose(loss, loss_ref, rtol=2e-2, atol=1e-2), \
            f"loss mismatch (ratio={ratio}): {loss} vs {loss_ref}"

    print("KERNEL_OK")
</pallas_src>

<mosaic_0001>
module attributes {stable_mosaic.version = 11 : i64} {
  func.func @_mlp_kernel(%arg0: i32, %arg1: memref<128x32xf32, #tpu.memory_space<vmem>>, %arg2: memref<32x64xf32, #tpu.memory_space<vmem>>, %arg3: memref<1x64xf32, #tpu.memory_space<vmem>>, %arg4: memref<64x32xf32, #tpu.memory_space<vmem>>, %arg5: memref<1x32xf32, #tpu.memory_space<vmem>>, %arg6: memref<1x32xf32, #tpu.memory_space<vmem>>, %arg7: memref<1x1xf32, #tpu.memory_space<vmem>>, %arg8: memref<128x1xf32, #tpu.memory_space<vmem>>) attributes {dimension_semantics = [#tpu.dimension_semantics<parallel>], iteration_bounds = array<i64: 2>, scalar_prefetch = 0 : i64, scratch_operands = 0 : i64, tpu.core_type = #tpu.core_type<tc>, window_params = [{transform_indices = @transform_0, window_bounds = array<i64: 128, 32>}, {pipeline_mode = #tpu.pipeline_mode<synchronous>, transform_indices = @transform_1, window_bounds = array<i64: 32, 64>}, {pipeline_mode = #tpu.pipeline_mode<synchronous>, transform_indices = @transform_2, window_bounds = array<i64: 1, 64>}, {pipeline_mode = #tpu.pipeline_mode<synchronous>, transform_indices = @transform_3, window_bounds = array<i64: 64, 32>}, {pipeline_mode = #tpu.pipeline_mode<synchronous>, transform_indices = @transform_4, window_bounds = array<i64: 1, 32>}, {pipeline_mode = #tpu.pipeline_mode<synchronous>, transform_indices = @transform_5, window_bounds = array<i64: 1, 32>}, {pipeline_mode = #tpu.pipeline_mode<synchronous>, transform_indices = @transform_6, window_bounds = array<i64: 1, 1>}, {transform_indices = @transform_7, window_bounds = array<i64: 128, 1>}]} {
    %c0 = arith.constant 0 : index
    %c0_0 = arith.constant 0 : index
    %0 = vector.load %arg1[%c0, %c0_0] : memref<128x32xf32, #tpu.memory_space<vmem>>, vector<128x32xf32>
    %c0_1 = arith.constant 0 : index
    %c0_2 = arith.constant 0 : index
    %1 = vector.load %arg2[%c0_1, %c0_2] : memref<32x64xf32, #tpu.memory_space<vmem>>, vector<32x64xf32>
    %cst = arith.constant dense<0.000000e+00> : vector<128x64xf32>
    %2 = tpu.matmul %0, %1, %cst {dimension_numbers = #tpu.dot_dimension_numbers<[1], [0], [0], [1], [0, 0, 1, 1], [], []>} : vector<128x32xf32>, vector<32x64xf32>, vector<128x64xf32> -> vector<128x64xf32>
    %c0_3 = arith.constant 0 : index
    %c0_4 = arith.constant 0 : index
    %3 = vector.load %arg3[%c0_3, %c0_4] : memref<1x64xf32, #tpu.memory_space<vmem>>, vector<1x64xf32>
    %4 = vector.broadcast %3 : vector<1x64xf32> to vector<128x64xf32>
    %5 = arith.addf %2, %4 : vector<128x64xf32>
    %cst_5 = arith.constant 0.000000e+00 : f32
    %6 = vector.broadcast %cst_5 : f32 to vector<128x64xf32>
    %7 = arith.maximumf %5, %6 : vector<128x64xf32>
    %c0_6 = arith.constant 0 : index
    %c0_7 = arith.constant 0 : index
    %8 = vector.load %arg4[%c0_6, %c0_7] : memref<64x32xf32, #tpu.memory_space<vmem>>, vector<64x32xf32>
    %cst_8 = arith.constant dense<0.000000e+00> : vector<128x32xf32>
    %9 = tpu.matmul %7, %8, %cst_8 {dimension_numbers = #tpu.dot_dimension_numbers<[1], [0], [0], [1], [0, 0, 1, 1], [], []>} : vector<128x64xf32>, vector<64x32xf32>, vector<128x32xf32> -> vector<128x32xf32>
    %c0_9 = arith.constant 0 : index
    %c0_10 = arith.constant 0 : index
    %10 = vector.load %arg5[%c0_9, %c0_10] : memref<1x32xf32, #tpu.memory_space<vmem>>, vector<1x32xf32>
    %11 = vector.broadcast %10 : vector<1x32xf32> to vector<128x32xf32>
    %12 = arith.addf %9, %11 : vector<128x32xf32>
    %cst_11 = arith.constant 0.000000e+00 : f32
    %13 = vector.broadcast %cst_11 : f32 to vector<128x32xf32>
    %14 = arith.maximumf %12, %13 : vector<128x32xf32>
    %c0_12 = arith.constant 0 : index
    %c0_13 = arith.constant 0 : index
    %15 = vector.load %arg6[%c0_12, %c0_13] : memref<1x32xf32, #tpu.memory_space<vmem>>, vector<1x32xf32>
    %16 = vector.broadcast %15 : vector<1x32xf32> to vector<128x32xf32>
    %17 = arith.mulf %14, %16 : vector<128x32xf32>
    %cst_14 = arith.constant dense<0.000000e+00> : vector<128xf32>
    %18 = vector.multi_reduction <add>, %17, %cst_14 [1] : vector<128x32xf32> to vector<128xf32>
    %19 = vector.shape_cast %18 : vector<128xf32> to vector<128x1xf32>
    %c0_15 = arith.constant 0 : index
    %c0_16 = arith.constant 0 : index
    %20 = vector.load %arg7[%c0_15, %c0_16] : memref<1x1xf32, #tpu.memory_space<vmem>>, vector<1x1xf32>
    %21 = vector.broadcast %20 : vector<1x1xf32> to vector<128x1xf32>
    %22 = arith.addf %19, %21 : vector<128x1xf32>
    %cst_17 = arith.constant 0.000000e+00 : f32
    %23 = vector.broadcast %cst_17 : f32 to vector<128x1xf32>
    %24 = arith.subf %23, %22 : vector<128x1xf32>
    %25 = math.exp %24 : vector<128x1xf32>
    %cst_18 = arith.constant 1.000000e+00 : f32
    %26 = vector.broadcast %cst_18 : f32 to vector<128x1xf32>
    %27 = arith.addf %26, %25 : vector<128x1xf32>
    %cst_19 = arith.constant 1.000000e+00 : f32
    %28 = vector.broadcast %cst_19 : f32 to vector<128x1xf32>
    %29 = arith.divf %28, %27 : vector<128x1xf32>
    %c0_20 = arith.constant 0 : index
    %c0_21 = arith.constant 0 : index
    %30 = vector.load %arg8[%c0_20, %c0_21] : memref<128x1xf32, #tpu.memory_space<vmem>>, vector<128x1xf32>
    tpu.vector_store %arg8[%c0_20, %c0_21], %29 {strides = array<i32>} : memref<128x1xf32, #tpu.memory_space<vmem>>, vector<128x1xf32>,
    return
  }
  func.func @transform_0(%arg0: i32) -> (i32, i32) {
    %c0_i32 = arith.constant 0 : i32
    %c0_i32_0 = arith.constant 0 : i32
    return %arg0, %c0_i32 : i32, i32
  }
  func.func @transform_1(%arg0: i32) -> (i32, i32) {
    %c0_i32 = arith.constant 0 : i32
    %c0_i32_0 = arith.constant 0 : i32
    %c0_i32_1 = arith.constant 0 : i32
    return %c0_i32, %c0_i32_0 : i32, i32
  }
  func.func @transform_2(%arg0: i32) -> (i32, i32) {
    %c0_i32 = arith.constant 0 : i32
    %c0_i32_0 = arith.constant 0 : i32
    %c0_i32_1 = arith.constant 0 : i32
    return %c0_i32, %c0_i32_0 : i32, i32
  }
  func.func @transform_3(%arg0: i32) -> (i32, i32) {
    %c0_i32 = arith.constant 0 : i32
    %c0_i32_0 = arith.constant 0 : i32
    %c0_i32_1 = arith.constant 0 : i32
    return %c0_i32, %c0_i32_0 : i32, i32
  }
  func.func @transform_4(%arg0: i32) -> (i32, i32) {
    %c0_i32 = arith.constant 0 : i32
    %c0_i32_0 = arith.constant 0 : i32
    %c0_i32_1 = arith.constant 0 : i32
    return %c0_i32, %c0_i32_0 : i32, i32
  }
  func.func @transform_5(%arg0: i32) -> (i32, i32) {
    %c0_i32 = arith.constant 0 : i32
    %c0_i32_0 = arith.constant 0 : i32
    %c0_i32_1 = arith.constant 0 : i32
    return %c0_i32, %c0_i32_0 : i32, i32
  }
  func.func @transform_6(%arg0: i32) -> (i32, i32) {
    %c0_i32 = arith.constant 0 : i32
    %c0_i32_0 = arith.constant 0 : i32
    %c0_i32_1 = arith.constant 0 : i32
    return %c0_i32, %c0_i32_0 : i32, i32
  }
  func.func @transform_7(%arg0: i32) -> (i32, i32) {
    %c0_i32 = arith.constant 0 : i32
    %c0_i32_0 = arith.constant 0 : i32
    return %arg0, %c0_i32 : i32, i32
  }
}

module attributes {stable_mosaic.version = 11 : i64} {
  func.func @_loss_kernel(%arg0: i32, %arg1: i32, %arg2: memref<2xf32, #tpu.memory_space<smem>>, %arg3: memref<128x1xf32, #tpu.memory_space<vmem>>, %arg4: memref<1x128xf32, #tpu.memory_space<vmem>>, %arg5: memref<128x32xbf16, #tpu.memory_space<vmem>>, %arg6: memref<32x128xbf16, #tpu.memory_space<vmem>>, %arg7: memref<1x8x128xf32, #tpu.memory_space<vmem>>, %arg8: memref<128x128xf32, #tpu.memory_space<vmem>>, %arg9: memref<128x1xf32, #tpu.memory_space<vmem>>, %arg10: memref<128x1xf32, #tpu.memory_space<vmem>>) attributes {dimension_semantics = [#tpu.dimension_semantics<parallel>, #tpu.dimension_semantics<arbitrary>], iteration_bounds = array<i64: 2, 2>, scalar_prefetch = 0 : i64, scratch_operands = 3 : i64, tpu.core_type = #tpu.core_type<tc>, window_params = [{transform_indices = @transform_0, window_bounds = array<i64: 2>}, {transform_indices = @transform_1, window_bounds = array<i64: 128, 1>}, {transform_indices = @transform_2, window_bounds = array<i64: 1, 128>}, {transform_indices = @transform_3, window_bounds = array<i64: 128, 32>}, {transform_indices = @transform_4, window_bounds = array<i64: 32, 128>}, {transform_indices = @transform_5, window_bounds = array<i64: 1, 8, 128>}]} {
    %c0_i32 = arith.constant 0 : i32
    %0 = arith.cmpi eq, %arg1, %c0_i32 : i32
    %1 = arith.extui %0 : i1 to i32
    %c0_i32_0 = arith.constant 0 : i32
    %2 = arith.cmpi ne, %1, %c0_i32_0 : i32
    scf.if %2 {
      %cst = arith.constant 0.000000e+00 : f32
      %9 = vector.broadcast %cst : f32 to vector<128x128xf32>
      %c0 = arith.constant 0 : index
      %c0_3 = arith.constant 0 : index
      %10 = vector.load %arg8[%c0, %c0_3] : memref<128x128xf32, #tpu.memory_space<vmem>>, vector<128x128xf32>
      tpu.vector_store %arg8[%c0, %c0_3], %9 {strides = array<i32>} : memref<128x128xf32, #tpu.memory_space<vmem>>, vector<128x128xf32>,
      %c0_4 = arith.constant 0 : index
      %11 = memref.load %arg2[%c0_4] : memref<2xf32, #tpu.memory_space<smem>>
      %c1 = arith.constant 1 : index
      %12 = memref.load %arg2[%c1] : memref<2xf32, #tpu.memory_space<smem>>
      %cst_5 = arith.constant 1.000000e+00 : f32
      %13 = arith.subf %11, %cst_5 : f32
      %14 = arith.mulf %11, %13 : f32
      %cst_6 = arith.constant 2.000000e+00 : f32
      %15 = arith.mulf %cst_6, %11 : f32
      %16 = arith.mulf %15, %12 : f32
      %17 = arith.subf %14, %16 : f32
      %cst_7 = arith.constant 1.000000e+00 : f32
      %18 = arith.subf %12, %cst_7 : f32
      %19 = arith.mulf %12, %18 : f32
      %20 = arith.addf %17, %19 : f32
      %21 = arith.mulf %11, %12 : f32
      %cst_8 = arith.constant 1.000000e+00 : f32
      %22 = arith.subf %12, %cst_8 : f32
      %23 = arith.mulf %12, %22 : f32
      %24 = arith.subf %21, %23 : f32
      %c0_9 = arith.constant 0 : index
      %c0_10 = arith.constant 0 : index
      %25 = vector.load %arg3[%c0_9, %c0_10] : memref<128x1xf32, #tpu.memory_space<vmem>>, vector<128x1xf32>
      %26 = vector.broadcast %20 : f32 to vector<128x1xf32>
      %27 = arith.mulf %26, %25 : vector<128x1xf32>
      %28 = vector.broadcast %24 : f32 to vector<128x1xf32>
      %29 = arith.addf %27, %28 : vector<128x1xf32>
      %c0_11 = arith.constant 0 : index
      %c0_12 = arith.constant 0 : index
      %30 = vector.load %arg9[%c0_11, %c0_12] : memref<128x1xf32, #tpu.memory_space<vmem>>, vector<128x1xf32>
      tpu.vector_store %arg9[%c0_11, %c0_12], %29 {strides = array<i32>} : memref<128x1xf32, #tpu.memory_space<vmem>>, vector<128x1xf32>,
      %31 = vector.broadcast %24 : f32 to vector<128x1xf32>
      %32 = arith.mulf %31, %25 : vector<128x1xf32>
      %cst_13 = arith.constant 1.000000e+00 : f32
      %33 = arith.subf %12, %cst_13 : f32
      %34 = arith.mulf %12, %33 : f32
      %35 = vector.broadcast %34 : f32 to vector<128x1xf32>
      %36 = arith.addf %32, %35 : vector<128x1xf32>
      %c0_14 = arith.constant 0 : index
      %c0_15 = arith.constant 0 : index
      %37 = vector.load %arg10[%c0_14, %c0_15] : memref<128x1xf32, #tpu.memory_space<vmem>>, vector<128x1xf32>
      tpu.vector_store %arg10[%c0_14, %c0_15], %36 {strides = array<i32>} : memref<128x1xf32, #tpu.memory_space<vmem>>, vector<128x1xf32>,
    } else {
    }
    %3 = arith.cmpi sge, %arg1, %arg0 : i32
    %4 = arith.extui %3 : i1 to i32
    %c0_i32_1 = arith.constant 0 : i32
    %5 = arith.cmpi ne, %4, %c0_i32_1 : i32
    scf.if %5 {
      %c0 = arith.constant 0 : index
      %c0_3 = arith.constant 0 : index
      %9 = vector.load %arg3[%c0, %c0_3] : memref<128x1xf32, #tpu.memory_space<vmem>>, vector<128x1xf32>
      %c0_4 = arith.constant 0 : index
      %c0_5 = arith.constant 0 : index
      %10 = vector.load %arg4[%c0_4, %c0_5] : memref<1x128xf32, #tpu.memory_space<vmem>>, vector<1x128xf32>
      %c0_6 = arith.constant 0 : index
      %c0_7 = arith.constant 0 : index
      %11 = vector.load %arg5[%c0_6, %c0_7] : memref<128x32xbf16, #tpu.memory_space<vmem>>, vector<128x32xbf16>
      %c0_8 = arith.constant 0 : index
      %c0_9 = arith.constant 0 : index
      %12 = vector.load %arg6[%c0_8, %c0_9] : memref<32x128xbf16, #tpu.memory_space<vmem>>, vector<32x128xbf16>
      %cst = arith.constant dense<0.000000e+00> : vector<128x128xf32>
      %13 = tpu.matmul %11, %12, %cst {dimension_numbers = #tpu.dot_dimension_numbers<[1], [0], [0], [1], [0, 0, 1, 1], [], []>} : vector<128x32xbf16>, vector<32x128xbf16>, vector<128x128xf32> -> vector<128x128xf32>
      %c0_10 = arith.constant 0 : index
      %c0_11 = arith.constant 0 : index
      %14 = vector.load %arg9[%c0_10, %c0_11] : memref<128x1xf32, #tpu.memory_space<vmem>>, vector<128x1xf32>
      %15 = vector.broadcast %14 : vector<128x1xf32> to vector<128x128xf32>
      %16 = vector.broadcast %10 : vector<1x128xf32> to vector<128x128xf32>
      %17 = arith.mulf %15, %16 : vector<128x128xf32>
      %c0_12 = arith.constant 0 : index
      %c0_13 = arith.constant 0 : index
      %18 = vector.load %arg10[%c0_12, %c0_13] : memref<128x1xf32, #tpu.memory_space<vmem>>, vector<128x1xf32>
      %19 = vector.broadcast %18 : vector<128x1xf32> to vector<128x128xf32>
      %20 = arith.addf %17, %19 : vector<128x128xf32>
      %21 = vector.broadcast %9 : vector<128x1xf32> to vector<128x128xf32>
      %22 = vector.broadcast %10 : vector<1x128xf32> to vector<128x128xf32>
      %23 = arith.mulf %21, %22 : vector<128x128xf32>
      %24 = tpu.reciprocal %20 {approx = true} : vector<128x128xf32> -> vector<128x128xf32>
      %25 = arith.mulf %23, %24 : vector<128x128xf32>
      %26 = arith.cmpi eq, %arg0, %arg1 : i32
      %cst_14 = arith.constant 1.000000e+00 : f32
      %cst_15 = arith.constant 2.000000e+00 : f32
      %27 = arith.select %26, %cst_14, %cst_15 : f32
      %c0_16 = arith.constant 0 : index
      %c0_17 = arith.constant 0 : index
      %28 = vector.load %arg8[%c0_16, %c0_17] : memref<128x128xf32, #tpu.memory_space<vmem>>, vector<128x128xf32>
      %29 = arith.mulf %13, %25 : vector<128x128xf32>
      %30 = vector.broadcast %27 : f32 to vector<128x128xf32>
      %31 = arith.mulf %30, %29 : vector<128x128xf32>
      %32 = arith.addf %28, %31 : vector<128x128xf32>
      %c0_18 = arith.constant 0 : index
      %c0_19 = arith.constant 0 : index
      %33 = vector.load %arg8[%c0_18, %c0_19] : memref<128x128xf32, #tpu.memory_space<vmem>>, vector<128x128xf32>
      tpu.vector_store %arg8[%c0_18, %c0_19], %32 {strides = array<i32>} : memref<128x128xf32, #tpu.memory_space<vmem>>, vector<128x128xf32>,
    } else {
    }
    %c1_i32 = arith.constant 1 : i32
    %6 = arith.cmpi eq, %arg1, %c1_i32 : i32
    %7 = arith.extui %6 : i1 to i32
    %c0_i32_2 = arith.constant 0 : i32
    %8 = arith.cmpi ne, %7, %c0_i32_2 : i32
    scf.if %8 {
      %c0 = arith.constant 0 : index
      %c0_3 = arith.constant 0 : index
      %9 = vector.load %arg8[%c0, %c0_3] : memref<128x128xf32, #tpu.memory_space<vmem>>, vector<128x128xf32>
      %10 = vector.shape_cast %9 : vector<128x128xf32> to vector<1x128x128xf32>
      %cst = arith.constant dense<0.000000e+00> : vector<1xf32>
      %11 = vector.multi_reduction <add>, %10, %cst [1, 2] : vector<1x128x128xf32> to vector<1xf32>
      %12 = vector.shape_cast %11 : vector<1xf32> to vector<1x1x1xf32>
      %13 = vector.extract %12[0, 0, 0] : f32 from vector<1x1x1xf32>
      %14 = vector.broadcast %13 : f32 to vector<1x8x128xf32>
      %c0_4 = arith.constant 0 : index
      %c0_5 = arith.constant 0 : index
      %c0_6 = arith.constant 0 : index
      %15 = vector.load %arg7[%c0_4, %c0_5, %c0_6] : memref<1x8x128xf32, #tpu.memory_space<vmem>>, vector<1x8x128xf32>
      tpu.vector_store %arg7[%c0_4, %c0_5, %c0_6], %14 {strides = array<i32>} : memref<1x8x128xf32, #tpu.memory_space<vmem>>, vector<1x8x128xf32>,
    } else {
    }
    return
  }
  func.func @transform_0(%arg0: i32, %arg1: i32) -> i32 {
    %c0_i32 = arith.constant 0 : i32
    %c0_i32_0 = arith.constant 0 : i32
    return %c0_i32 : i32
  }
  func.func @transform_1(%arg0: i32, %arg1: i32) -> (i32, i32) {
    %c0_i32 = arith.constant 0 : i32
    %c0_i32_0 = arith.constant 0 : i32
    return %arg0, %c0_i32 : i32, i32
  }
  func.func @transform_2(%arg0: i32, %arg1: i32) -> (i32, i32) {
    %c0_i32 = arith.constant 0 : i32
    %c0_i32_0 = arith.constant 0 : i32
    return %c0_i32, %arg1 : i32, i32
  }
  func.func @transform_3(%arg0: i32, %arg1: i32) -> (i32, i32) {
    %c0_i32 = arith.constant 0 : i32
    %c0_i32_0 = arith.constant 0 : i32
    return %arg0, %c0_i32 : i32, i32
  }
  func.func @transform_4(%arg0: i32, %arg1: i32) -> (i32, i32) {
    %c0_i32 = arith.constant 0 : i32
    %c0_i32_0 = arith.constant 0 : i32
    return %c0_i32, %arg1 : i32, i32
  }
  func.func @transform_5(%arg0: i32, %arg1: i32) -> (i32, i32, i32) {
    %c0_i32 = arith.constant 0 : i32
    %c0_i32_0 = arith.constant 0 : i32
    %c0_i32_1 = arith.constant 0 : i32
    return %arg0, %c0_i32, %c0_i32_0 : i32, i32, i32
  }
}

</mosaic_0001>

<bundles_post_ra>
// kernel: scorer_forward.2
= control target key start
LH: loop header
LB: loop body
LE: loop exit
PB: predicated region body
PF: predicated region fallthrough
CT: control target
= control target key end

     0   :  { %s1327_s26 = smov 0   ;;  %s1550_s0 = inlined_call_operand.vmem [shape: f32[256,32], index: 0, kind: input, shape index: {}]   ;;  %s1551_s1 = inlined_call_operand.vmem [shape: f32[32,64], index: 1, kind: input, shape index: {}]   ;;  %s1552_s2 = inlined_call_operand.vmem [shape: f32[1,64], index: 2, kind: input, shape index: {}]   ;;  %s1553_s3 = inlined_call_operand.vmem [shape: f32[64,32], index: 3, kind: input, shape index: {}]   ;;  %s1554_s4 = inlined_call_operand.vmem [shape: f32[1,32], index: 4, kind: input, shape index: {}]   ;;  %s1555_s5 = inlined_call_operand.vmem [shape: f32[1,32], index: 5, kind: input, shape index: {}]   ;;  %s1556_s6 = inlined_call_operand.<no memory space> [shape: f32[1,1], index: 6, kind: input, shape index: {}]   ;;  %s1557_s7 = inlined_call_operand.vmem [shape: f32[256,1], index: 7, kind: output, shape index: {}]  }
   0x1   :  { %v12_v0 = vstv %s1556_s6 }
   0x2   :  { %13 = vst [vmem:[#allocation2] sm:$0x1] %v12_v0 }
   0x3 LB: > { %s1009_s27 = sadd.s32 4294967295, %s1282_s26   ;;  %p1013_p0 = scmp.ge.s32.totalorder %s1282_s26, 1  ;;  %s1282_s26 = sphi %s1327_s26, %s19_s26  }
   0x4   : > { %p240_p1 = scmp.lt.s32.totalorder %s1282_s26, 3 }
   0x6   : > { %p241_p2 = pnand %p1013_p0, %p240_p1 }
   0x7   : > { %v300_v1 = vld [vmem:[%s1551_s1] sm:$0xff] (!%p241_p2)  ;;  %v301_v2 = vld [vmem:[%s1551_s1 + $0x8] sm:$0xff] (!%p241_p2)  ;;  %v302_v3 = vld [vmem:[%s1551_s1 + $0x10] sm:$0xff] (!%p241_p2)  ;;  %s1014_s10 = sshll.u32 (!%p241_p2), %s1009_s27, 4  ;;  %vm311_vm0 = vcmask (!%p241_p2), 261120   ;;  %vm536_vm1 = vcmask (!%p241_p2), 523264  }
   0x8   : > { %244 = sbr.rel (%p241_p2) target bundleno = 664 (0x298), region = 48  ;;  %v1172_v4 = vpack.c.bf16 (!%p241_p2), %v301_v2, %v300_v1  ;;  %v303_v5 = vld [vmem:[%s1551_s1 + $0x18] sm:$0xff] (!%p241_p2)  ;;  %p273_p3 = scmp.lt.s32.totalorder (!%p241_p2), %s1014_s10, 31  ;;  %v521_v6 = vld [vmem:[%s1553_s3] sm:$0xff] (!%p241_p2)  ;;  %v522_v7 = vld [vmem:[%s1553_s3 + $0x8] sm:$0xff] (!%p241_p2)  ;;  %vm936_vm2 = vcmask (!%p241_p2), 7168  }
   0x9   : > { %v1176_v8 = vpack.c.bf16 (!%p241_p2), %v303_v5, %v302_v3  ;;  %v1180_v9 = vpack.c.bf16 (!%p241_p2), %v522_v7, %v521_v6  ;;  %v523_v10 = vld [vmem:[%s1553_s3 + $0x10] sm:$0xff] (!%p241_p2)  ;;  %v524_v11 = vld [vmem:[%s1553_s3 + $0x18] sm:$0xff] (!%p241_p2)  ;;  %v525_v13 = vld [vmem:[%s1553_s3 + $0x20] sm:$0xff] (!%p241_p2) }
   0xa   : > { %1173 = vmatprep.subr.bf16.mxu0 (!%p241_p2), %v1172_v4  ;;  %v1184_v12 = vpack.c.bf16 (!%p241_p2), %v524_v11, %v523_v10  ;;  %v526_v14 = vld [vmem:[%s1553_s3 + $0x28] sm:$0xff] (!%p241_p2)  ;;  %v527_v32 = vld [vmem:[%s1553_s3 + $0x30] sm:$0xff] (!%p241_p2)  ;;  %v528_v33 = vld [vmem:[%s1553_s3 + $0x38] sm:$0xff] (!%p241_p2) }
   0xb   : > { %1175 = vmatpush3.bf16.msra.mxu0 (!%p241_p2), %v1172_v4  ;;  %1196 = vmatprep.subr.bf16.mxu1 (!%p241_p2), %v1180_v9  ;;  %v1188_v17 = vpack.c.bf16 (!%p241_p2), %v526_v14, %v525_v13  ;;  %v1192_v34 = vpack.c.bf16 (!%p241_p2), %v528_v33, %v527_v32  ;;  %v1018_v35 = vld [vmem:[%s1552_s2] ss:$0 sm:$0xff] (!%p241_p2) }
   0xc   : > { %1177 = vmatprep.subr.bf16.mxu0 (!%p241_p2), %v1176_v8  ;;  %1200 = vmatpush3.bf16.msra.mxu1 (!%p241_p2), %v1180_v9 }
   0xd   : > { %1197 = vmatprep.subr.bf16.mxu1 (!%p241_p2), %v1184_v12 }
   0xf   : > { %s1559_s10 = smov (!%p273_p3, %s1014_s10), 31  ;;  %1179 = vmatpush3.bf16.msra.mxu0 %v1176_v8 }
  0x10   : > { %s1015_s21 = sshll.u32 %s1559_s10, 3  ;;  %1181 = vmatprep.subr.bf16.mxu0 %v1180_v9  ;;  %1201 = vmatpush3.bf16.msra.mxu1 %v1184_v12 }
  0x11   : > { %s1373_s29 = scalar_lea.vmem %s1550_s0, %s1015_s21  ;;  %1198 = vmatprep.subr.bf16.mxu1 %v1188_v17  ;;  %s1510_s19 = scalar_lea.vmem %s1557_s7, %s1015_s21 }
  0x12   : > { %v284_v15 = vld [vmem:[%s1373_s29] sm:$0xff]  ;;  %v285_v16 = vld [vmem:[%s1373_s29 + $0x8] sm:$0xff]  ;;  %v286_v18 = vld [vmem:[%s1373_s29 + $0x10] sm:$0xff] }
  0x13   : > { %1108 = vmatprep.mubr.msk.f32.mxu0 %vm311_vm0, %v284_v15  ;;  %v287_v19 = vld [vmem:[%s1373_s29 + $0x18] sm:$0xff]  ;;  %v288_v20 = vld [vmem:[%s1373_s29 + $0x20] sm:$0xff]  ;;  %v289_v21 = vld [vmem:[%s1373_s29 + $0x28] sm:$0xff] }
  0x14   : > { %1109 = vmatmul.mubr.msk.f32.vlgmr.msra.gmra.mrb[0].mxu0 %vm311_vm0, %v285_v16  ;;  %1202 = vmatpush3.bf16.msra.mxu1 %v1188_v17  ;;  %v290_v22 = vld [vmem:[%s1373_s29 + $0x30] sm:$0xff]  ;;  %v291_v23 = vld [vmem:[%s1373_s29 + $0x38] sm:$0xff]  ;;  %v292_v24 = vld [vmem:[%s1373_s29 + $0x40] sm:$0xff] }
  0x15   : > { %1111 = vmatprep.mubr.msk.f32.mxu0 %vm311_vm0, %v286_v18  ;;  %1183 = vmatpush3.bf16.msra.mxu0 %v1180_v9  ;;  %v293_v25 = vld [vmem:[%s1373_s29 + $0x48] sm:$0xff]  ;;  %v294_v26 = vld [vmem:[%s1373_s29 + $0x50] sm:$0xff]  ;;  %v295_v27 = vld [vmem:[%s1373_s29 + $0x58] sm:$0xff] }
  0x16   : > { %1185 = vmatprep.subr.bf16.mxu0 %v1184_v12  ;;  %v296_v28 = vld [vmem:[%s1373_s29 + $0x60] sm:$0xff]  ;;  %v297_v29 = vld [vmem:[%s1373_s29 + $0x68] sm:$0xff]  ;;  %v298_v30 = vld [vmem:[%s1373_s29 + $0x70] sm:$0xff]  ;;  %1199 = vmatprep.subr.bf16.mxu1 %v1192_v34 }
  0x17   : > { %v299_v31 = vld [vmem:[%s1373_s29 + $0x78] sm:$0xff] }
  0x18   : > { %1112 = vmatmul.mubr.msk.f32.gmra.mrb[2].mxu0 %vm311_vm0, %v287_v19  ;;  %1203 = vmatpush3.bf16.msra.mxu1 %v1192_v34 }
  0x19   : > { %1114 = vmatprep.mubr.msk.f32.mxu0 %vm311_vm0, %v288_v20  ;;  %1187 = vmatpush3.bf16.msra.mxu0 %v1184_v12  ;;  %v1435_v20 = vld [vmem:[%s1554_s4] ss:$0 sm:$0xff] }
  0x1a   : > { %1189 = vmatprep.subr.bf16.mxu0 %v1188_v17 }
  0x1c   : > { %1115 = vmatmul.mubr.msk.f32.gmra.mrb[4].mxu0 %vm311_vm0, %v289_v21 }
  0x1d   : > { %1117 = vmatprep.mubr.msk.f32.mxu0 %vm311_vm0, %v290_v22  ;;  %1191 = vmatpush3.bf16.msra.mxu0 %v1188_v17 }
  0x1e   : > { %1193 = vmatprep.subr.bf16.mxu0 %v1192_v34 }
  0x20   : > { %1118 = vmatmul.mubr.msk.f32.gmra.mrb[6].mxu0 %vm311_vm0, %v291_v23 }
  0x21   : > { %1120 = vmatprep.mubr.msk.f32.mxu0 %vm311_vm0, %v292_v24  ;;  %1195 = vmatpush3.bf16.msra.mxu0 %v1192_v34 }
  0x24   : > { %1121 = vmatmul.mubr.msk.f32.gmra.mrb[8].mxu0 %vm311_vm0, %v293_v25  ;;  %v1442_v25 = vld [vmem:[%s1555_s5] ss:$0 sm:$0xff] }
  0x25   : > { %1123 = vmatprep.mubr.msk.f32.mxu0 %vm311_vm0, %v294_v26 }
  0x28   : > { %1124 = vmatmul.mubr.msk.f32.gmra.mrb[10].mxu0 %vm311_vm0, %v295_v27 }
  0x29   : > { %1126 = vmatprep.mubr.msk.f32.mxu0 %vm311_vm0, %v296_v28 }
  0x2c   : > { %1127 = vmatmul.mubr.msk.f32.gmra.mrb[12].mxu0 %vm311_vm0, %v297_v29 }
  0x2d   : > { %1129 = vmatprep.mubr.msk.f32.mxu0 %vm311_vm0, %v298_v30 }
  0x30   : > { %1130 = vmatmul.mubr.msk.f32.gmra.mrb[14].mxu0 %vm311_vm0, %v299_v31 }
  0xe7   : > { %v1110_v36 = vpop.f32.mrb[0].mxu0 }
  0xe8   : > { %v432_v37 = vadd.f32 %v1110_v36, %v1018_v35  ;;  %v426_v38 = vpop.f32.mrb[1].mxu0 }
  0xe9   : > { %v427_v39 = vadd.f32 %v1018_v35, %v426_v38 }
  0xea   : > { %v506_v42 = vmax.f32 %v432_v37, 0.0 }
  0xeb   : > { %v505_v40 = vmax.f32 %v427_v39, 0.0  ;;  %v1113_v41 = vpop.f32.mrb[2].mxu0 }
  0xec   : > { %v442_v43 = vadd.f32 %v1113_v41, %v1018_v35  ;;  %v436_v44 = vpop.f32.mrb[3].mxu0 }
  0xed   : > { %v437_v45 = vadd.f32 %v1018_v35, %v436_v44  ;;  %1148 = vmatprep.mubr.msk.f32.mxu0 %vm536_vm1, %v505_v40 }
  0xee   : > { %1149 = vmatmul.mubr.msk.f32.vlgmr.msra.gmra.mrb[16].mxu0 %vm536_vm1, %v506_v42  ;;  %v508_v48 = vmax.f32 %v442_v43, 0.0 }
  0xef   : > { %v507_v46 = vmax.f32 %v437_v45, 0.0  ;;  %v1116_v47 = vpop.f32.mrb[4].mxu0 }
  0xf0   : > { %v452_v49 = vadd.f32 %v1116_v47, %v1018_v35  ;;  %v446_v50 = vpop.f32.mrb[5].mxu0 }
  0xf1   : > { %v447_v51 = vadd.f32 %v1018_v35, %v446_v50  ;;  %1151 = vmatprep.mubr.msk.f32.mxu1 %vm536_vm1, %v507_v46 }
  0xf2   : > { %v510_v52 = vmax.f32 %v452_v49, 0.0  ;;  %1152 = vmatmul.mubr.msk.f32.vlgmr.msra.gmra.mrb[0].mxu1 %vm536_vm1, %v508_v48 }
  0xf3   : > { %v509_v53 = vmax.f32 %v447_v51, 0.0  ;;  %v1119_v54 = vpop.f32.mrb[6].mxu0 }
  0xf4   : > { %v462_v55 = vadd.f32 %v1119_v54, %v1018_v35  ;;  %v456_v56 = vpop.f32.mrb[7].mxu0 }
  0xf5   : > { %v457_v57 = vadd.f32 %v1018_v35, %v456_v56  ;;  %1154 = vmatprep.mubr.msk.f32.mxu1 %vm536_vm1, %v509_v53 }
  0xf6   : > { %v512_v58 = vmax.f32 %v462_v55, 0.0  ;;  %1155 = vmatmul.mubr.msk.f32.gmra.mrb[2].mxu1 %vm536_vm1, %v510_v52 }
  0xf7   : > { %v511_v59 = vmax.f32 %v457_v57, 0.0  ;;  %v1122_v60 = vpop.f32.mrb[8].mxu0 }
  0xf8   : > { %v472_v61 = vadd.f32 %v1122_v60, %v1018_v35  ;;  %v466_v62 = vpop.f32.mrb[9].mxu0 }
  0xf9   : > { %v467_v63 = vadd.f32 %v1018_v35, %v466_v62  ;;  %1157 = vmatprep.mubr.msk.f32.mxu1 %vm536_vm1, %v511_v59 }
  0xfa   : > { %v514_v0 = vmax.f32 %v472_v61, 0.0  ;;  %1158 = vmatmul.mubr.msk.f32.gmra.mrb[4].mxu1 %vm536_vm1, %v512_v58 }
  0xfb   : > { %v513_v1 = vmax.f32 %v467_v63, 0.0  ;;  %v1125_v2 = vpop.f32.mrb[10].mxu0 }
  0xfc   : > { %v482_v3 = vadd.f32 %v1125_v2, %v1018_v35  ;;  %v476_v4 = vpop.f32.mrb[11].mxu0 }
  0xfd   : > { %v477_v5 = vadd.f32 %v1018_v35, %v476_v4  ;;  %1160 = vmatprep.mubr.msk.f32.mxu1 %vm536_vm1, %v513_v1 }
  0xfe   : > { %v516_v6 = vmax.f32 %v482_v3, 0.0  ;;  %1161 = vmatmul.mubr.msk.f32.gmra.mrb[6].mxu1 %vm536_vm1, %v514_v0 }
  0xff   : > { %v515_v7 = vmax.f32 %v477_v5, 0.0  ;;  %v1128_v8 = vpop.f32.mrb[12].mxu0 }
 0x100   : > { %v492_v9 = vadd.f32 %v1128_v8, %v1018_v35  ;;  %v486_v10 = vpop.f32.mrb[13].mxu0 }
 0x101   : > { %v487_v11 = vadd.f32 %v1018_v35, %v486_v10  ;;  %1163 = vmatprep.mubr.msk.f32.mxu1 %vm536_vm1, %v515_v7 }
 0x102   : > { %v518_v12 = vmax.f32 %v492_v9, 0.0  ;;  %1164 = vmatmul.mubr.msk.f32.gmra.mrb[8].mxu1 %vm536_vm1, %v516_v6 }
 0x103   : > { %v517_v13 = vmax.f32 %v487_v11, 0.0  ;;  %v1131_v14 = vpop.f32.mrb[14].mxu0 }
 0x104   : > { %v502_v15 = vadd.f32 %v1131_v14, %v1018_v35  ;;  %v496_v16 = vpop.f32.mrb[15].mxu0 }
 0x105   : > { %v497_v17 = vadd.f32 %v1018_v35, %v496_v16  ;;  %1166 = vmatprep.mubr.msk.f32.mxu1 %vm536_vm1, %v517_v13 }
 0x106   : > { %v520_v18 = vmax.f32 %v502_v15, 0.0  ;;  %1167 = vmatmul.mubr.msk.f32.gmra.mrb[10].mxu1 %vm536_vm1, %v518_v12 }
 0x107   : > { %v519_v19 = vmax.f32 %v497_v17, 0.0 }
 0x109   : > { %1169 = vmatprep.mubr.msk.f32.mxu1 %vm536_vm1, %v519_v19 }
 0x10a   : > { %1170 = vmatmul.mubr.msk.f32.gmra.mrb[12].mxu1 %vm536_vm1, %v520_v18 }
 0x1c1   : > { %v1150_v21 = vpop.f32.mrb[16].mxu0 }
 0x1c2   : > { %v657_v22 = vadd.f32 %v1150_v21, %v1435_v20  ;;  %v651_v23 = vpop.f32.mrb[17].mxu0 }
 0x1c3   : > { %v652_v24 = vadd.f32 %v1435_v20, %v651_v23 }
 0x1c4   : > { %v731_v26 = vmax.f32 %v657_v22, 0.0 }
 0x1c5   : > { %v730_v27 = vmax.f32 %v652_v24, 0.0  ;;  %v1153_v28 = vpop.f32.mrb[0].mxu1 }
 0x1c6   : > { %v667_v29 = vadd.f32 %v1153_v28, %v1435_v20  ;;  %v661_v30 = vpop.f32.mrb[1].mxu1  ;;  %v754_v31 = vmul.f32 %v1442_v25, %v731_v26 }
 0x1c7   : > { %v662_v32 = vadd.f32 %v1435_v20, %v661_v30  ;;  %v753_v35 = vmul.f32 %v1442_v25, %v730_v27 }
 0x1c8   : > { %v733_v33 = vmax.f32 %v667_v29, 0.0  ;;  %v772_v34 = vsel %vm311_vm0, %v754_v31, 0.0 }
 0x1c9   : > { %v732_v36 = vmax.f32 %v662_v32, 0.0  ;;  %v1156_v37 = vpop.f32.mrb[2].mxu1  ;;  %773 = vadd.xlane.f32.xlu0 %v772_v34  ;;  %v769_v44 = vsel %vm311_vm0, %v753_v35, 0.0 }
 0x1ca   : > { %v677_v38 = vadd.f32 %v1156_v37, %v1435_v20  ;;  %v671_v39 = vpop.f32.mrb[3].mxu1  ;;  %v756_v40 = vmul.f32 %v1442_v25, %v733_v33 }
 0x1cb   : > { %v672_v41 = vadd.f32 %v1435_v20, %v671_v39  ;;  %v755_v45 = vmul.f32 %v1442_v25, %v732_v36  ;;  %v1490_v39 = vld [vmem:[#allocation2] ss:$0 sm:$0xff] }
 0x1cc   : > { %v735_v42 = vmax.f32 %v677_v38, 0.0  ;;  %v778_v43 = vsel %vm311_vm0, %v756_v40, 0.0 }
 0x1cd   : > { %v734_v46 = vmax.f32 %v672_v41, 0.0  ;;  %779 = vadd.xlane.f32.xlu1 %v778_v43  ;;  %v1159_v47 = vpop.f32.mrb[4].mxu1  ;;  %770 = vadd.xlane.f32.xlu0 %v769_v44  ;;  %v775_v53 = vsel %vm311_vm0, %v755_v45, 0.0 }
 0x1ce   : > { %v687_v48 = vadd.f32 %v1159_v47, %v1435_v20  ;;  %v681_v49 = vpop.f32.mrb[5].mxu1  ;;  %v758_v54 = vmul.f32 %v1442_v25, %v735_v42 }
 0x1cf   : > { %v682_v50 = vadd.f32 %v1435_v20, %v681_v49  ;;  %v757_v51 = vmul.f32 %v1442_v25, %v734_v46 }
 0x1d0   : > { %v737_v52 = vmax.f32 %v687_v48, 0.0  ;;  %v784_v63 = vsel %vm311_vm0, %v758_v54, 0.0 }
 0x1d1   : > { %v736_v55 = vmax.f32 %v682_v50, 0.0  ;;  %v1162_v56 = vpop.f32.mrb[6].mxu1  ;;  %776 = vadd.xlane.f32.xlu1 %v775_v53  ;;  %v781_v57 = vsel %vm311_vm0, %v757_v51, 0.0 }
 0x1d2   : > { %v697_v58 = vadd.f32 %v1162_v56, %v1435_v20  ;;  %v691_v59 = vpop.f32.mrb[7].mxu1  ;;  %782 = vadd.xlane.f32.xlu0 %v781_v57  ;;  %v760_v0 = vmul.f32 %v1442_v25, %v737_v52 }
 0x1d3   : > { %v692_v60 = vadd.f32 %v1435_v20, %v691_v59  ;;  %v759_v61 = vmul.f32 %v1442_v25, %v736_v55 }
 0x1d4   : > { %v739_v62 = vmax.f32 %v697_v58, 0.0  ;;  %v790_v9 = vsel %vm311_vm0, %v760_v0, 0.0 }
 0x1d5   : > { %v738_v1 = vmax.f32 %v692_v60, 0.0  ;;  %v1165_v2 = vpop.f32.mrb[8].mxu1  ;;  %785 = vadd.xlane.f32.xlu1 %v784_v63  ;;  %v787_v3 = vsel %vm311_vm0, %v759_v61, 0.0 }
 0x1d6   : > { %v707_v4 = vadd.f32 %v1165_v2, %v1435_v20  ;;  %v701_v5 = vpop.f32.mrb[9].mxu1  ;;  %788 = vadd.xlane.f32.xlu0 %v787_v3  ;;  %v762_v10 = vmul.f32 %v1442_v25, %v739_v62 }
 0x1d7   : > { %v702_v6 = vadd.f32 %v1435_v20, %v701_v5  ;;  %v761_v7 = vmul.f32 %v1442_v25, %v738_v1 }
 0x1d8   : > { %v741_v8 = vmax.f32 %v707_v4, 0.0  ;;  %v796_v19 = vsel %vm311_vm0, %v762_v10, 0.0 }
 0x1d9   : > { %v740_v11 = vmax.f32 %v702_v6, 0.0  ;;  %v1168_v12 = vpop.f32.mrb[10].mxu1  ;;  %791 = vadd.xlane.f32.xlu1 %v790_v9  ;;  %v793_v13 = vsel %vm311_vm0, %v761_v7, 0.0 }
 0x1da   : > { %v717_v14 = vadd.f32 %v1168_v12, %v1435_v20  ;;  %v711_v15 = vpop.f32.mrb[11].mxu1  ;;  %794 = vadd.xlane.f32.xlu0 %v793_v13  ;;  %v764_v21 = vmul.f32 %v1442_v25, %v741_v8 }
 0x1db   : > { %v712_v16 = vadd.f32 %v1435_v20, %v711_v15  ;;  %v763_v17 = vmul.f32 %v1442_v25, %v740_v11 }
 0x1dc   : > { %v743_v18 = vmax.f32 %v717_v14, 0.0  ;;  %v802_v31 = vsel %vm311_vm0, %v764_v21, 0.0 }
 0x1dd   : > { %v742_v22 = vmax.f32 %v712_v16, 0.0  ;;  %v1171_v23 = vpop.f32.mrb[12].mxu1  ;;  %797 = vadd.xlane.f32.xlu1 %v796_v19  ;;  %v799_v24 = vsel %vm311_vm0, %v763_v17, 0.0 }
 0x1de   : > { %v727_v26 = vadd.f32 %v1171_v23, %v1435_v20  ;;  %v721_v27 = vpop.f32.mrb[13].mxu1  ;;  %800 = vadd.xlane.f32.xlu0 %v799_v24  ;;  %v766_v32 = vmul.f32 %v1442_v25, %v743_v18 }
 0x1df   : > { %v722_v28 = vadd.f32 %v1435_v20, %v721_v27  ;;  %v765_v29 = vmul.f32 %v1442_v25, %v742_v22 }
 0x1e0   : > { %v745_v30 = vmax.f32 %v727_v26, 0.0  ;;  %v808_v36 = vsel %vm311_vm0, %v766_v32, 0.0 }
 0x1e1   : > { %v744_v33 = vmax.f32 %v722_v28, 0.0  ;;  %803 = vadd.xlane.f32.xlu1 %v802_v31  ;;  %v805_v34 = vsel %vm311_vm0, %v765_v29, 0.0 }
 0x1e2   : > { %806 = vadd.xlane.f32.xlu0 %v805_v34  ;;  %v768_v37 = vmul.f32 %v1442_v25, %v745_v30 }
 0x1e3   : > { %v767_v35 = vmul.f32 %v1442_v25, %v744_v33 }
 0x1e4   : > { %v814_v38 = vsel %vm311_vm0, %v768_v37, 0.0 }
 0x1e5   : > { %809 = vadd.xlane.f32.xlu1 %v808_v36  ;;  %v811_v20 = vsel %vm311_vm0, %v767_v35, 0.0 }
 0x1e6   : > { %812 = vadd.xlane.f32.xlu0 %v811_v20 }
 0x1e9   : > { %815 = vadd.xlane.f32.xlu1 %v814_v38 }
 0x256   : > { %v774_v40 = vpop.xlane.xlu0 %773 }
 0x257   : > { %v825_v41 = vadd.f32 %v1490_v39, %v774_v40 }
 0x259   : > { %v841_v42 = vsub.f32 0.0, %v825_v41 }
 0x25a   : > { %v780_v43 = vpop.xlane.xlu1 %779  ;;  %v771_v44 = vpop.xlane.xlu0 %770 }
 0x25b   : > { %v858_v45 = vmul.f32 1.442695, %v841_v42  ;;  %v827_v46 = vadd.f32 %v1490_v39, %v780_v43  ;;  %v824_v25 = vadd.f32 %v1490_v39, %v771_v44 }
 0x25d   : > { %1212 = vpow2.f32 %v858_v45  ;;  %v843_v47 = vsub.f32 0.0, %v827_v46  ;;  %v840_v48 = vsub.f32 0.0, %v824_v25 }
 0x25e   : > { %v777_v49 = vpop.xlane.xlu1 %776 }
 0x25f   : > { %v862_v50 = vmul.f32 1.442695, %v843_v47  ;;  %v856_v51 = vmul.f32 1.442695, %v840_v48  ;;  %v826_v52 = vadd.f32 %v1490_v39, %v777_v49  ;;  %v783_v53 = vpop.xlane.xlu0 %782 }
 0x260   : > { %v828_v54 = vadd.f32 %v1490_v39, %v783_v53 }
 0x261   : > { %1214 = vpow2.f32 %v862_v50  ;;  %v842_v55 = vsub.f32 0.0, %v826_v52 }
 0x262   : > { %1216 = vpow2.f32 %v856_v51  ;;  %v844_v56 = vsub.f32 0.0, %v828_v54  ;;  %v786_v57 = vpop.xlane.xlu1 %785 }
 0x263   : > { %v860_v58 = vmul.f32 1.442695, %v842_v55  ;;  %v829_v59 = vadd.f32 %v1490_v39, %v786_v57  ;;  %v789_v60 = vpop.xlane.xlu0 %788 }
 0x264   : > { %v864_v61 = vmul.f32 1.442695, %v844_v56  ;;  %v830_v62 = vadd.f32 %v1490_v39, %v789_v60 }
 0x265   : > { %1218 = vpow2.f32 %v860_v58  ;;  %v845_v63 = vsub.f32 0.0, %v829_v59 }
 0x266   : > { %1220 = vpow2.f32 %v864_v61  ;;  %v846_v0 = vsub.f32 0.0, %v830_v62  ;;  %v792_v1 = vpop.xlane.xlu1 %791 }
 0x267   : > { %v1213_v2 = vpop.eup %1212  ;;  %v866_v3 = vmul.f32 1.442695, %v845_v63  ;;  %v831_v4 = vadd.f32 %v1490_v39, %v792_v1  ;;  %v795_v5 = vpop.xlane.xlu0 %794 }
 0x268   : > { %v889_v6 = vadd.f32 1.0, %v1213_v2  ;;  %v868_v7 = vmul.f32 1.442695, %v846_v0  ;;  %v832_v8 = vadd.f32 %v1490_v39, %v795_v5 }
 0x269   : > { %1222 = vpow2.f32 %v866_v3  ;;  %v847_v9 = vsub.f32 0.0, %v831_v4 }
 0x26a   : > { %1224 = vrcp.f32 %v889_v6  ;;  %v848_v10 = vsub.f32 0.0, %v832_v8  ;;  %v798_v11 = vpop.xlane.xlu1 %797 }
 0x26b   : > { %v1215_v12 = vpop.eup %1214  ;;  %1226 = vpow2.f32 %v868_v7  ;;  %v870_v13 = vmul.f32 1.442695, %v847_v9  ;;  %v833_v14 = vadd.f32 %v1490_v39, %v798_v11  ;;  %v801_v15 = vpop.xlane.xlu0 %800 }
 0x26c   : > { %v1217_v16 = vpop.eup %1216  ;;  %v891_v17 = vadd.f32 1.0, %v1215_v12  ;;  %v872_v18 = vmul.f32 1.442695, %v848_v10  ;;  %v834_v19 = vadd.f32 %v1490_v39, %v801_v15 }
 0x26d   : > { %v888_v21 = vadd.f32 1.0, %v1217_v16  ;;  %1228 = vpow2.f32 %v870_v13  ;;  %v849_v22 = vsub.f32 0.0, %v833_v14 }
 0x26e   : > { %1230 = vrcp.f32 %v891_v17  ;;  %v850_v23 = vsub.f32 0.0, %v834_v19  ;;  %v804_v24 = vpop.xlane.xlu1 %803 }
 0x26f   : > { %v1219_v26 = vpop.eup %1218  ;;  %1232 = vrcp.f32 %v888_v21  ;;  %v874_v27 = vmul.f32 1.442695, %v849_v22  ;;  %v835_v28 = vadd.f32 %v1490_v39, %v804_v24  ;;  %v807_v29 = vpop.xlane.xlu0 %806 }
 0x270   : > { %v1221_v30 = vpop.eup %1220  ;;  %v890_v31 = vadd.f32 1.0, %v1219_v26  ;;  %1234 = vpow2.f32 %v872_v18  ;;  %v876_v32 = vmul.f32 1.442695, %v850_v23  ;;  %v836_v33 = vadd.f32 %v1490_v39, %v807_v29 }
 0x271   : > { %v892_v34 = vadd.f32 1.0, %v1221_v30  ;;  %1236 = vpow2.f32 %v874_v27  ;;  %v851_v35 = vsub.f32 0.0, %v835_v28 }
 0x272   : > { %1238 = vrcp.f32 %v890_v31  ;;  %v852_v36 = vsub.f32 0.0, %v836_v33  ;;  %v810_v37 = vpop.xlane.xlu1 %809 }
 0x273   : > { %v1223_v20 = vpop.eup %1222  ;;  %1240 = vrcp.f32 %v892_v34  ;;  %v878_v38 = vmul.f32 1.442695, %v851_v35  ;;  %v837_v40 = vadd.f32 %v1490_v39, %v810_v37  ;;  %v813_v41 = vpop.xlane.xlu0 %812 }
 0x274   : > { %v1225_v42 = vpop.eup %1224  ;;  %v893_v43 = vadd.f32 1.0, %v1223_v20  ;;  %1242 = vpow2.f32 %v876_v32  ;;  %v880_v44 = vmul.f32 1.442695, %v852_v36  ;;  %v838_v45 = vadd.f32 %v1490_v39, %v813_v41 }
 0x275   : > { %v1227_v46 = vpop.eup %1226  ;;  %938 = vst.msk [vmem:[%s1510_s19 + $0x8] sm:$0xff] %vm936_vm2, %v1225_v42  ;;  %1244 = vpow2.f32 %v878_v38  ;;  %v853_v25 = vsub.f32 0.0, %v837_v40 }
 0x276   : > { %1246 = vrcp.f32 %v893_v43  ;;  %v894_v47 = vadd.f32 1.0, %v1227_v46  ;;  %v854_v48 = vsub.f32 0.0, %v838_v45  ;;  %v816_v49 = vpop.xlane.xlu1 %815 }
 0x277   : > { %v1229_v50 = vpop.eup %1228  ;;  %1248 = vpow2.f32 %v880_v44  ;;  %v882_v51 = vmul.f32 1.442695, %v853_v25  ;;  %v839_v52 = vadd.f32 %v1490_v39, %v816_v49 }
 0x278   : > { %v1231_v53 = vpop.eup %1230  ;;  %1250 = vrcp.f32 %v894_v47  ;;  %v895_v54 = vadd.f32 1.0, %v1229_v50  ;;  %v884_v55 = vmul.f32 1.442695, %v854_v48 }
 0x279   : > { %v1233_v56 = vpop.eup %1232  ;;  %940 = vst.msk [vmem:[%s1510_s19 + $0x18] sm:$0xff] %vm936_vm2, %v1231_v53  ;;  %1252 = vpow2.f32 %v882_v51  ;;  %v855_v57 = vsub.f32 0.0, %v839_v52 }
 0x27a   : > { %v1235_v58 = vpop.eup %1234  ;;  %937 = vst.msk [vmem:[%s1510_s19] sm:$0xff] %vm936_vm2, %v1233_v56  ;;  %1254 = vrcp.f32 %v895_v54 }
 0x27b   : > { %v1237_v59 = vpop.eup %1236  ;;  %v896_v60 = vadd.f32 1.0, %v1235_v58  ;;  %1256 = vpow2.f32 %v884_v55  ;;  %v886_v39 = vmul.f32 1.442695, %v855_v57 }
 0x27c   : > { %v1239_v61 = vpop.eup %1238  ;;  %v897_v62 = vadd.f32 1.0, %v1237_v59 }
 0x27d   : > { %v1241_v63 = vpop.eup %1240  ;;  %939 = vst.msk [vmem:[%s1510_s19 + $0x10] sm:$0xff] %vm936_vm2, %v1239_v61  ;;  %1258 = vrcp.f32 %v896_v60 }
 0x27e   : > { %v1243_v0 = vpop.eup %1242  ;;  %941 = vst.msk [vmem:[%s1510_s19 + $0x20] sm:$0xff] %vm936_vm2, %v1241_v63  ;;  %1260 = vrcp.f32 %v897_v62 }
 0x27f   : > { %v1245_v1 = vpop.eup %1244  ;;  %v898_v2 = vadd.f32 1.0, %v1243_v0  ;;  %1262 = vpow2.f32 %v886_v39 }
 0x280   : > { %v1247_v3 = vpop.eup %1246  ;;  %v899_v4 = vadd.f32 1.0, %v1245_v1 }
 0x281   : > { %v1249_v5 = vpop.eup %1248  ;;  %942 = vst.msk [vmem:[%s1510_s19 + $0x28] sm:$0xff] %vm936_vm2, %v1247_v3  ;;  %1264 = vrcp.f32 %v898_v2 }
 0x282   : > { %v1251_v6 = vpop.eup %1250  ;;  %1266 = vrcp.f32 %v899_v4  ;;  %v900_v7 = vadd.f32 1.0, %v1249_v5 }
 0x283   : > { %v1253_v8 = vpop.eup %1252  ;;  %943 = vst.msk [vmem:[%s1510_s19 + $0x30] sm:$0xff] %vm936_vm2, %v1251_v6 }
 0x284   : > { %v1255_v9 = vpop.eup %1254  ;;  %1268 = vrcp.f32 %v900_v7  ;;  %v901_v10 = vadd.f32 1.0, %v1253_v8 }
 0x285   : > { %v1257_v11 = vpop.eup %1256  ;;  %944 = vst.msk [vmem:[%s1510_s19 + $0x38] sm:$0xff] %vm936_vm2, %v1255_v9 }
 0x286   : > { %1270 = vrcp.f32 %v901_v10  ;;  %v902_v12 = vadd.f32 1.0, %v1257_v11 }
 0x287   : > { %v1259_v13 = vpop.eup %1258 }
 0x288   : > { %v1261_v14 = vpop.eup %1260  ;;  %945 = vst.msk [vmem:[%s1510_s19 + $0x40] sm:$0xff] %vm936_vm2, %v1259_v13  ;;  %1272 = vrcp.f32 %v902_v12 }
 0x289   : > { %v1263_v15 = vpop.eup %1262  ;;  %946 = vst.msk [vmem:[%s1510_s19 + $0x48] sm:$0xff] %vm936_vm2, %v1261_v14 }
 0x28a   : > { %v903_v16 = vadd.f32 1.0, %v1263_v15 }
 0x28b   : > { %v1265_v17 = vpop.eup %1264 }
 0x28c   : > { %v1267_v18 = vpop.eup %1266  ;;  %947 = vst.msk [vmem:[%s1510_s19 + $0x50] sm:$0xff] %vm936_vm2, %v1265_v17  ;;  %1274 = vrcp.f32 %v903_v16 }
 0x28d   : > { %948 = vst.msk [vmem:[%s1510_s19 + $0x58] sm:$0xff] %vm936_vm2, %v1267_v18 }
 0x28e   : > { %v1269_v19 = vpop.eup %1268 }
 0x28f   : > { %949 = vst.msk [vmem:[%s1510_s19 + $0x60] sm:$0xff] %vm936_vm2, %v1269_v19 }
 0x290   : > { %v1271_v21 = vpop.eup %1270 }
 0x291   : > { %950 = vst.msk [vmem:[%s1510_s19 + $0x68] sm:$0xff] %vm936_vm2, %v1271_v21 }
 0x292   : > { %v1273_v22 = vpop.eup %1272 }
 0x293   : > { %951 = vst.msk [vmem:[%s1510_s19 + $0x70] sm:$0xff] %vm936_vm2, %v1273_v22 }
 0x296   : > { %v1275_v23 = vpop.eup %1274 }
 0x297   : > { %952 = vst.msk [vmem:[%s1510_s19 + $0x78] sm:$0xff] %vm936_vm2, %v1275_v23 }
 0x298 PF: > { %s19_s26 = sadd.s32 1, %s1282_s26  }
 0x299   : > { %p16_p4 = scmp.ge.s32.totalorder %s19_s26, 4  }
 0x29b   :  { %18 = sbr.rel (!%p16_p4) target bundleno = 3 (0x3), region = 78 }

// kernel: scorer_forward.3
= control target key start
LH: loop header
LB: loop body
LE: loop exit
PB: predicated region body
PF: predicated region fallthrough
CT: control target
= control target key end

     0   :  { %s2066_s0 = inlined_call_operand.vmem [shape: f32[2], index: 0, kind: input, shape index: {}]   ;;  %s2067_s1 = inlined_call_operand.vmem [shape: f32[256,1], index: 1, kind: input, shape index: {}]   ;;  %s2068_s2 = inlined_call_operand.vmem [shape: f32[1,256], index: 2, kind: input, shape index: {}]   ;;  %s2069_s3 = inlined_call_operand.vmem [shape: bf16[256,32], index: 3, kind: input, shape index: {}]   ;;  %s2070_s4 = inlined_call_operand.vmem [shape: bf16[32,256], index: 4, kind: input, shape index: {}]   ;;  %s2071_s5 = inlined_call_operand.vmem [shape: f32[2,8,128], index: 5, kind: output, shape index: {}]  }
   0x1   :  { %2072 = sst [smem:[#allocation10_spill]] %s2066_s0 }
   0x2   :  { %2073 = sst [smem:[#allocation11_spill]] %s2070_s4 }
   0x3   :  { %10 = vsyncpa [#allocation6], 0  ;;  %s1626_s18 = smov 0   ;;  %s1628_s19 = smov 0  }
   0x4   :  { %s1630_s20 = smov 0   ;;  %s1632_s21 = smov 0  }
   0x5   :  { %s1634_s22 = smov 0   ;;  %s1636_s23 = smov 0  }
   0x6   :  { %s1638_s24 = smov 0  }
   0x7 LB: > { %s1327_s25 = sadd.s32 4294967295, %s1591_s24   ;;  %s25_s26 = sadd.s32 1, %s1583_s22  ;;  %s1591_s24 = sphi %s1638_s24, %s16_s24   ;;  %s1587_s23 = sphi %s1636_s23, %s2088_s23   ;;  %s1583_s22 = sphi %s1634_s22, %s2087_s22   ;;  %s1579_s21 = sphi %s1632_s21, %s2086_s21   ;;  %s1575_s20 = sphi %s1630_s20, %s2085_s20   ;;  %s1571_s19 = sphi %s1628_s19, %s2084_s19   ;;  %s1567_s18 = sphi %s1626_s18, %s2083_s18  }
   0x8   : > { %p26_p0 = scmp.ge.s32.totalorder %s25_s26, 2  ;;  %s28_s27 = sadd.s32 1, %s1587_s23 }
   0x9   : > { %s134_s28 = sadd.s32 1, %s1571_s19  ;;  %p141_p1 = scmp.ne.s32.totalorder %s1571_s19, %s1567_s18 }
   0xa   : > { %s2090_s26 = smov (%p26_p0, %s25_s26), 0  ;;  %s2092_s27 = smov (!%p26_p0, %s28_s27), %s1587_s23 }
   0xb   : > { %s131_s29 = ssub.s32 %s1583_s22, %s2090_s26  ;;  %p142_p2 = scmp.eq.s32.totalorder %s1591_s24, 0 }
   0xc   : > { %p30_p3 = scmp.ge.s32.totalorder %s2092_s27, 2  ;;  %p132_p4 = scmp.eq.s32.totalorder %s131_s29, 0 }
   0xd   : > { %p1673_p5 = por %p142_p2, %p141_p1  ;;  %p1329_p6 = scmp.ge.s32.totalorder %s1591_s24, 1 }
   0xe   : > { %s2094_s27 = smov (%p30_p3, %s2092_s27), 0  ;;  %p184_p7 = scmp.lt.s32.totalorder %s1591_s24, 5 }
   0xf   : > { %2075 = sst [smem:[#allocation9_spill]] %s2094_s27  ;;  %p1684_p8 = scmp.eq.s32.totalorder %s1327_s25, 0 }
  0x10   : > { %s1681_s6 = scalar_select %p132_p4, %s1571_s19, %s134_s28  }
  0x11   : > { %p1688_p9 = pnand %p1329_p6, %p184_p7  ;;  %s2078_s0 = sld [smem:[#allocation10_spill]] }
  0x13   : > { %p1409_p10 = pneg %p1688_p9 }
  0x15   : > { %p1410_p11 = pnand %p1684_p8, %p1409_p10 }
  0x17   : > { %s197_s11 = sshll.u32 %s2078_s0, 4  ;;  %p1520_p13 = pneg %p1410_p11  ;;  %s198_s11 = int_to_ptr.vmem [resolvable:$true] %s197_s11 }
  0x18   : > { %s1518_s12 = scalar_lea.vmem %s198_s11, 16  ;;  %p1526_p2 = scmp.lt.s32.totalorder %s198_s11, %s198_s11 }
  0x19   : > { %p1519_p12 = scmp.ne.s32.totalorder %s198_s11, %s1518_s12  ;;  %p1527_p3 = scmp.lt.s32.totalorder %s1518_s12, %s1518_s12 }
  0x1b   : > { %p1521_p0 = pnand %p1520_p13, %p1519_p12  ;;  %p1528_p4 = por %p1527_p3, %p1526_p2 }
  0x1d   : > { %p1522_p1 = pneg %p1521_p0 }
  0x1f   : > { %p1529_p6 = pnand %p1528_p4, %p1522_p1 }
  0x21   : > { %1532 = shalt.err (!%p1529_p6)
}
  0x22   : > { %s1593_s13 = smov [#allocation5]   ;;  %p1331_p7 = scmp.ge.s32.totalorder %s1591_s24, 4 }
  0x23   : > { %1412 = dma.vmem_to_smem (!%p1410_p11), %s198_s11, 16, %s1593_s13, [#allocation6]  }
  0x24   : > { %204 = sbr.rel (%p1331_p7) target bundleno = 55 (0x37), region = 20 }
  0x2b   : > { %231 = sbr.rel (!%p1673_p5) target bundleno = 55 (0x37), region = 36  ;;  %s233_s14 = sand.u32 (%p1673_p5), 1, %s1571_s19  }
  0x2c   : > { %s1333_s15 = sshll.u32 (%p1673_p5), %s1583_s22, 2  ;;  %s1332_s16 = sshll.u32 (%p1673_p5), %s233_s14, 4 }
  0x2d   : > { %s2079_s4 = sld [smem:[#allocation11_spill]] (%p1673_p5)  ;;  %s235_s29 = scalar_lea.vmem (%p1673_p5), [#allocation7], %s1332_s16 }
  0x33   : > { %s237_s28 = scalar_lea.vmem %s2079_s4, %s1333_s15 }
  0x34   : > { %v253_v0 = vld [vmem:[%s237_s28] sm:$0xf]  ;;  %v255_v1 = vld [vmem:[%s237_s28 + $0x8] sm:$0xf]  ;;  %v257_v2 = vld [vmem:[%s237_s28 + $0x10] sm:$0xf] }
  0x35   : > { %254 = vst [vmem:[%s235_s29] sm:$0xf] %v253_v0  ;;  %256 = vst [vmem:[%s235_s29 + $0x4] sm:$0xf] %v255_v1  ;;  %v259_v3 = vld [vmem:[%s237_s28 + $0x18] sm:$0xf] }
  0x36   : > { %258 = vst [vmem:[%s235_s29 + $0x8] sm:$0xf] %v257_v2  ;;  %260 = vst [vmem:[%s235_s29 + $0xc] sm:$0xf] %v259_v3 }
  0x37 PF: > { %294 = sbr.rel (%p1688_p9) target bundleno = 593 (0x251), region = 77 }
  0x3e   : > { %1562 = dma.done.wait (%p1684_p8), [#allocation6], 16  }
  0x3f   : > { %1564 = vsyncadd (%p1684_p8), [#allocation6], 4294967280  ;;  %s301_s30 = sand.u32 1, %s1567_s18  }
  0x40   : > { %s1714_s9 = sshll.u32 %s301_s30, 4 }
  0x41   : > { %307 = sfence }
  0x42   : > { %s1337_s8 = sshll.u32 %s1579_s21, 4  ;;  %p347_p5 = scmp.lt.s32.totalorder %s1575_s20, 1 }
  0x43   : > { %p342_p9 = scmp.lt.s32.totalorder %s1337_s8, 31  ;;  %p356_p10 = scmp.lt.s32.totalorder %s1579_s21, 1 }
  0x44   : > { %s1721_s11 = scalar_select %p347_p5, %s1575_s20, 1 }
  0x45   : > { %s2096_s8 = smov (!%p342_p9, %s1337_s8), 31  ;;  %p1342_p8 = scmp.ne.s32.totalorder %s1575_s20, 0 }
  0x46   : > { %s349_s12 = scalar_lea.vmem %s2068_s2, %s1721_s11  ;;  %s1338_s13 = sshll.u32 %s2096_s8, 3  ;;  %v1594_v4 = vmov (!%p1342_p8), 0.0   ;;  %vm443_vm0 = vcmask (!%p1342_p8), 7168  }
  0x47   : > { %s1340_s14 = sshll.u32 %s2096_s8, 2  ;;  %s1730_s17 = scalar_lea.vmem %s2067_s1, %s1338_s13  ;;  %365 = vst [vmem:[#allocation2] sm:$0xff] (!%p1342_p8), %v1594_v4  ;;  %366 = vst [vmem:[#allocation2 + $0x8] sm:$0xff] (!%p1342_p8), %v1594_v4 }
  0x48   : > { %s1735_s29 = scalar_lea.vmem %s2069_s3, %s1340_s14  ;;  %364 = sbr.rel (%p1342_p8) target bundleno = 112 (0x70), region = 89  ;;  %367 = vst [vmem:[#allocation2 + $0x10] sm:$0xff] (!%p1342_p8), %v1594_v4  ;;  %368 = vst [vmem:[#allocation2 + $0x18] sm:$0xff] (!%p1342_p8), %v1594_v4  ;;  %v393_v5 = vld [vmem:[%s1730_s17] sm:$0xff] (!%p1342_p8)  ;;  %v394_v6 = vld [vmem:[%s1730_s17 + $0x8] sm:$0xff] (!%p1342_p8) }
  0x49   : > { %s357_s30 = scalar_select %p356_p10, %s1579_s21, 1 }
  0x4a   : > { %s381_s8 = sld [smem:[#allocation5]] (!%p1342_p8)  ;;  %s1343_s7 = sld [smem:[#allocation5 + $0x1]] (!%p1342_p8)  ;;  %369 = vst [vmem:[#allocation2 + $0x20] sm:$0xff] (!%p1342_p8), %v1594_v4  ;;  %370 = vst [vmem:[#allocation2 + $0x28] sm:$0xff] (!%p1342_p8), %v1594_v4  ;;  %v395_v7 = vld [vmem:[%s1730_s17 + $0x10] sm:$0xff] (!%p1342_p8)  ;;  %v1748_v8 = vld [vmem:[%s1730_s17 + $0x18] sm:$0xff] (!%p1342_p8) }
  0x4b   : > { %s1341_s10 = sshll.u32 %s357_s30, 3  ;;  %371 = vst [vmem:[#allocation2 + $0x30] sm:$0xff] (!%p1342_p8), %v1594_v4  ;;  %372 = vst [vmem:[#allocation2 + $0x38] sm:$0xff] (!%p1342_p8), %v1594_v4  ;;  %v1751_v9 = vld [vmem:[%s1730_s17 + $0x20] sm:$0xff] (!%p1342_p8)  ;;  %v1754_v10 = vld [vmem:[%s1730_s17 + $0x28] sm:$0xff] (!%p1342_p8) }
  0x4c   : > { %s1741_s27 = scalar_lea.vmem %s2071_s5, %s1341_s10  ;;  %373 = vst [vmem:[#allocation2 + $0x40] sm:$0xff] (!%p1342_p8), %v1594_v4  ;;  %374 = vst [vmem:[#allocation2 + $0x48] sm:$0xff] (!%p1342_p8), %v1594_v4  ;;  %v1759_v12 = vld [vmem:[%s1730_s17 + $0x30] sm:$0xff] (!%p1342_p8)  ;;  %v1762_v13 = vld [vmem:[%s1730_s17 + $0x38] sm:$0xff] (!%p1342_p8) }
  0x4d   : > { %375 = vst [vmem:[#allocation2 + $0x50] sm:$0xff] (!%p1342_p8), %v1594_v4  ;;  %376 = vst [vmem:[#allocation2 + $0x58] sm:$0xff] (!%p1342_p8), %v1594_v4  ;;  %v1771_v23 = vld [vmem:[%s1730_s17 + $0x40] sm:$0xff] (!%p1342_p8)  ;;  %v1774_v24 = vld [vmem:[%s1730_s17 + $0x48] sm:$0xff] (!%p1342_p8) }
  0x4e   : > { %377 = vst [vmem:[#allocation2 + $0x60] sm:$0xff] (!%p1342_p8), %v1594_v4  ;;  %378 = vst [vmem:[#allocation2 + $0x68] sm:$0xff] (!%p1342_p8), %v1594_v4  ;;  %v403_v29 = vld [vmem:[%s1730_s17 + $0x50] sm:$0xff] (!%p1342_p8)  ;;  %v1782_v30 = vld [vmem:[%s1730_s17 + $0x58] sm:$0xff] (!%p1342_p8) }
  0x4f   : > { %379 = vst [vmem:[#allocation2 + $0x70] sm:$0xff] %v1594_v4  ;;  %380 = vst [vmem:[#allocation2 + $0x78] sm:$0xff] %v1594_v4  ;;  %v1785_v31 = vld [vmem:[%s1730_s17 + $0x60] sm:$0xff]  ;;  %v1792_v36 = vld [vmem:[%s1730_s17 + $0x68] sm:$0xff] }
  0x50   : > { %s1344_s0 = sadd.f32 -1.0, %s381_s8  ;;  %s385_s4 = smul.f32 2.0, %s381_s8  ;;  %v1795_v37 = vld [vmem:[%s1730_s17 + $0x70] sm:$0xff]  ;;  %v1798_v38 = vld [vmem:[%s1730_s17 + $0x78] sm:$0xff] }
  0x51   : > { %s1345_s10 = sadd.f32 -1.0, %s1343_s7  ;;  %s391_s18 = smul.f32 %s1343_s7, %s381_s8 }
  0x52   : > { %s384_s13 = smul.f32 %s1344_s0, %s381_s8 }
  0x53   : > { %s386_s14 = smul.f32 %s1343_s7, %s385_s4 }
  0x54   : > { %s389_s15 = smul.f32 %s1345_s10, %s1343_s7 }
  0x55   : > { %s387_s16 = ssub.f32 %s384_s13, %s386_s14 }
  0x56   : > { %s392_s25 = ssub.f32 %s391_s18, %s389_s15  ;;  %v1764_v14 = vstv %s389_s15 }
  0x57   : > { %s390_s28 = sadd.f32 %s389_s15, %s387_s16 }
  0x58   : > { %v1756_v11 = vstv %s392_s25 }
  0x59   : > { %v409_v15 = vstv %s390_s28  ;;  %v460_v16 = vmul.f32 %v1756_v11, %v393_v5  ;;  %v461_v17 = vmul.f32 %v1756_v11, %v394_v6  ;;  %v462_v18 = vmul.f32 %v1756_v11, %v395_v7 }
  0x5a   : > { %v410_v19 = vmul.f32 %v409_v15, %v393_v5  ;;  %v411_v20 = vmul.f32 %v409_v15, %v394_v6  ;;  %v412_v21 = vmul.f32 %v409_v15, %v395_v7  ;;  %v413_v22 = vmul.f32 %v409_v15, %v1748_v8 }
  0x5b   : > { %v414_v25 = vmul.f32 %v409_v15, %v1751_v9  ;;  %v415_v26 = vmul.f32 %v409_v15, %v1754_v10  ;;  %v416_v27 = vmul.f32 %v409_v15, %v1759_v12  ;;  %v417_v28 = vmul.f32 %v409_v15, %v1762_v13 }
  0x5c   : > { %v427_v32 = vadd.f32 %v1756_v11, %v410_v19  ;;  %v428_v33 = vadd.f32 %v1756_v11, %v411_v20  ;;  %v429_v34 = vadd.f32 %v1756_v11, %v412_v21  ;;  %v430_v35 = vadd.f32 %v1756_v11, %v413_v22 }
  0x5d   : > { %v431_v39 = vadd.f32 %v1756_v11, %v414_v25  ;;  %v432_v40 = vadd.f32 %v1756_v11, %v415_v26  ;;  %v433_v41 = vadd.f32 %v1756_v11, %v416_v27  ;;  %v434_v42 = vadd.f32 %v1756_v11, %v417_v28 }
  0x5e   : > { %444 = vst.msk [vmem:[#allocation3] sm:$0xff] %vm443_vm0, %v427_v32  ;;  %445 = vst.msk [vmem:[#allocation3 + $0x8] sm:$0xff] %vm443_vm0, %v428_v33  ;;  %v418_v43 = vmul.f32 %v409_v15, %v1771_v23  ;;  %v419_v44 = vmul.f32 %v409_v15, %v1774_v24  ;;  %v420_v45 = vmul.f32 %v409_v15, %v403_v29 }
  0x5f   : > { %446 = vst.msk [vmem:[#allocation3 + $0x10] sm:$0xff] %vm443_vm0, %v429_v34  ;;  %447 = vst.msk [vmem:[#allocation3 + $0x18] sm:$0xff] %vm443_vm0, %v430_v35  ;;  %v421_v46 = vmul.f32 %v409_v15, %v1782_v30  ;;  %v422_v47 = vmul.f32 %v409_v15, %v1785_v31  ;;  %v423_v48 = vmul.f32 %v409_v15, %v1792_v36 }
  0x60   : > { %448 = vst.msk [vmem:[#allocation3 + $0x20] sm:$0xff] %vm443_vm0, %v431_v39  ;;  %449 = vst.msk [vmem:[#allocation3 + $0x28] sm:$0xff] %vm443_vm0, %v432_v40  ;;  %v424_v49 = vmul.f32 %v409_v15, %v1795_v37  ;;  %v425_v50 = vmul.f32 %v409_v15, %v1798_v38  ;;  %v435_v51 = vadd.f32 %v1756_v11, %v418_v43 }
  0x61   : > { %450 = vst.msk [vmem:[#allocation3 + $0x30] sm:$0xff] %vm443_vm0, %v433_v41  ;;  %451 = vst.msk [vmem:[#allocation3 + $0x38] sm:$0xff] %vm443_vm0, %v434_v42  ;;  %v436_v52 = vadd.f32 %v1756_v11, %v419_v44  ;;  %v437_v53 = vadd.f32 %v1756_v11, %v420_v45  ;;  %v438_v54 = vadd.f32 %v1756_v11, %v421_v46 }
  0x62   : > { %v439_v55 = vadd.f32 %v1756_v11, %v422_v47  ;;  %v440_v56 = vadd.f32 %v1756_v11, %v423_v48  ;;  %v441_v57 = vadd.f32 %v1756_v11, %v424_v49  ;;  %v442_v58 = vadd.f32 %v1756_v11, %v425_v50  ;;  %452 = vst.msk [vmem:[#allocation3 + $0x40] sm:$0xff] %vm443_vm0, %v435_v51 }
  0x63   : > { %453 = vst.msk [vmem:[#allocation3 + $0x48] sm:$0xff] %vm443_vm0, %v436_v52  ;;  %454 = vst.msk [vmem:[#allocation3 + $0x50] sm:$0xff] %vm443_vm0, %v437_v53  ;;  %v477_v59 = vadd.f32 %v1764_v14, %v460_v16  ;;  %v478_v60 = vadd.f32 %v1764_v14, %v461_v17  ;;  %v479_v61 = vadd.f32 %v1764_v14, %v462_v18 }
  0x64   : > { %455 = vst.msk [vmem:[#allocation3 + $0x58] sm:$0xff] %vm443_vm0, %v438_v54  ;;  %v463_v62 = vmul.f32 %v1756_v11, %v1748_v8  ;;  %456 = vst.msk [vmem:[#allocation3 + $0x60] sm:$0xff] %vm443_vm0, %v439_v55  ;;  %v464_v63 = vmul.f32 %v1756_v11, %v1751_v9  ;;  %v465_v0 = vmul.f32 %v1756_v11, %v1754_v10 }
  0x65   : > { %457 = vst.msk [vmem:[#allocation3 + $0x68] sm:$0xff] %vm443_vm0, %v440_v56  ;;  %458 = vst.msk [vmem:[#allocation3 + $0x70] sm:$0xff] %vm443_vm0, %v441_v57  ;;  %v466_v1 = vmul.f32 %v1756_v11, %v1759_v12  ;;  %v467_v2 = vmul.f32 %v1756_v11, %v1762_v13  ;;  %v468_v4 = vmul.f32 %v1756_v11, %v1771_v23 }
  0x66   : > { %459 = vst.msk [vmem:[#allocation3 + $0x78] sm:$0xff] %vm443_vm0, %v442_v58  ;;  %493 = vst.msk [vmem:[#allocation4] sm:$0xff] %vm443_vm0, %v477_v59  ;;  %v480_v3 = vadd.f32 %v1764_v14, %v463_v62  ;;  %v469_v5 = vmul.f32 %v1756_v11, %v1774_v24  ;;  %v470_v6 = vmul.f32 %v1756_v11, %v403_v29 }
  0x67   : > { %494 = vst.msk [vmem:[#allocation4 + $0x8] sm:$0xff] %vm443_vm0, %v478_v60  ;;  %495 = vst.msk [vmem:[#allocation4 + $0x10] sm:$0xff] %vm443_vm0, %v479_v61  ;;  %v481_v7 = vadd.f32 %v1764_v14, %v464_v63  ;;  %v482_v8 = vadd.f32 %v1764_v14, %v465_v0  ;;  %v483_v9 = vadd.f32 %v1764_v14, %v466_v1 }
  0x68   : > { %v484_v10 = vadd.f32 %v1764_v14, %v467_v2  ;;  %496 = vst.msk [vmem:[#allocation4 + $0x18] sm:$0xff] %vm443_vm0, %v480_v3  ;;  %v485_v12 = vadd.f32 %v1764_v14, %v468_v4  ;;  %v486_v13 = vadd.f32 %v1764_v14, %v469_v5  ;;  %v487_v15 = vadd.f32 %v1764_v14, %v470_v6 }
  0x69   : > { %v471_v16 = vmul.f32 %v1756_v11, %v1782_v30  ;;  %497 = vst.msk [vmem:[#allocation4 + $0x20] sm:$0xff] %vm443_vm0, %v481_v7  ;;  %498 = vst.msk [vmem:[#allocation4 + $0x28] sm:$0xff] %vm443_vm0, %v482_v8  ;;  %v472_v17 = vmul.f32 %v1756_v11, %v1785_v31  ;;  %v473_v18 = vmul.f32 %v1756_v11, %v1792_v36 }
  0x6a   : > { %499 = vst.msk [vmem:[#allocation4 + $0x30] sm:$0xff] %vm443_vm0, %v483_v9  ;;  %500 = vst.msk [vmem:[#allocation4 + $0x38] sm:$0xff] %vm443_vm0, %v484_v10  ;;  %v474_v19 = vmul.f32 %v1756_v11, %v1795_v37  ;;  %v475_v20 = vmul.f32 %v1756_v11, %v1798_v38 }
  0x6b   : > { %501 = vst.msk [vmem:[#allocation4 + $0x40] sm:$0xff] %vm443_vm0, %v485_v12  ;;  %502 = vst.msk [vmem:[#allocation4 + $0x48] sm:$0xff] %vm443_vm0, %v486_v13  ;;  %v488_v21 = vadd.f32 %v1764_v14, %v471_v16  ;;  %v489_v22 = vadd.f32 %v1764_v14, %v472_v17  ;;  %v490_v23 = vadd.f32 %v1764_v14, %v473_v18 }
  0x6c   : > { %503 = vst.msk [vmem:[#allocation4 + $0x50] sm:$0xff] %vm443_vm0, %v487_v15  ;;  %v491_v24 = vadd.f32 %v1764_v14, %v474_v19  ;;  %v492_v25 = vadd.f32 %v1764_v14, %v475_v20 }
  0x6d   : > { %504 = vst.msk [vmem:[#allocation4 + $0x58] sm:$0xff] %vm443_vm0, %v488_v21  ;;  %505 = vst.msk [vmem:[#allocation4 + $0x60] sm:$0xff] %vm443_vm0, %v489_v22 }
  0x6e   : > { %506 = vst.msk [vmem:[#allocation4 + $0x68] sm:$0xff] %vm443_vm0, %v490_v23  ;;  %507 = vst.msk [vmem:[#allocation4 + $0x70] sm:$0xff] %vm443_vm0, %v491_v24 }
  0x6f   : > { %508 = vst.msk [vmem:[#allocation4 + $0x78] sm:$0xff] %vm443_vm0, %v492_v25 }
  0x70 PF: > { %p1346_p11 = scmp.lt.s32.totalorder %s1575_s20, %s1579_s21 }
  0x71   : > { %v726_v11 = vld [vmem:[#allocation3 + $0x10] sm:$0xff] (!%p1346_p11)  ;;  %v724_v14 = vld [vmem:[#allocation3] sm:$0xff] (!%p1346_p11)  ;;  %v1595_v26 = vmov (!%p1346_p11), 0   ;;  %s2080_s30 = scalar_lea.vmem (!%p1346_p11), [#allocation7], %s1714_s9  ;;  %v727_v28 = vld [vmem:[#allocation3 + $0x18] sm:$0xff] (!%p1346_p11)  ;;  %vm602_vm1 = vcmask (!%p1346_p11), 261120   ;;  %p1082_p12 = scmp.eq.s32.totalorder (!%p1346_p11), %s1579_s21, %s1575_s20 }
  0x72   : > { %512 = sbr.rel (%p1346_p11) target bundleno = 355 (0x163), region = 93  ;;  %1475 = vset.pattern.permute.xlu1 (!%p1346_p11), %v1595_v26  ;;  %1474 = vset.pattern.permute.xlu0 (!%p1346_p11), %v1595_v26  ;;  %v1476_v27 = vld [vmem:[%s2080_s30] sm:$0xff] (!%p1346_p11)   ;;  %v725_v29 = vld [vmem:[#allocation3 + $0x8] sm:$0xff] (!%p1346_p11)  ;;  %s2081_s8 = smov (!%p1346_p11), %s2080_s30  ;;  %v731_v37 = vld [vmem:[#allocation3 + $0x38] sm:$0xff] (!%p1346_p11) }
  0x73   : > { %752 = vperm.xlu1 (!%p1346_p11), %1475, %v726_v11   ;;  %742 = vperm.xlu0 (!%p1346_p11), %1474, %v724_v14   ;;  %v1477_v30 = vld [vmem:[%s2081_s8 + $0x8] sm:$0xff] (!%p1346_p11)   ;;  %v1478_v31 = vld [vmem:[%s1735_s29] sm:$0xff] (!%p1346_p11)   ;;  %v730_v38 = vld [vmem:[#allocation3 + $0x30] sm:$0xff] (!%p1346_p11) }
  0x74   : > { %1379 = vmatprep.subr.bf16.mxu0 (!%p1346_p11), %v1476_v27  ;;  %1399 = vmatprep.subr.bf16.mxu1 (!%p1346_p11), %v1476_v27  ;;  %v729_v32 = vld [vmem:[#allocation3 + $0x28] sm:$0xff] (!%p1346_p11)  ;;  %v728_v33 = vld [vmem:[#allocation3 + $0x20] sm:$0xff] (!%p1346_p11)  ;;  %v1482_v39 = vld [vmem:[%s1735_s29 + $0x10] sm:$0xff] (!%p1346_p11)  }
  0x75   : > { %1380 = vmatpush3.bf16.msra.mxu0 (!%p1346_p11), %v1476_v27  ;;  %1401 = vmatpush3.bf16.msra.mxu1 (!%p1346_p11), %v1476_v27  ;;  %v1479_v34 = vld [vmem:[%s1735_s29 + $0x20] sm:$0xff] (!%p1346_p11)   ;;  %v1480_v35 = vld [vmem:[%s1735_s29 + $0x8] sm:$0xff] (!%p1346_p11)   ;;  %v1483_v40 = vld [vmem:[%s1735_s29 + $0x30] sm:$0xff] (!%p1346_p11)  }
  0x76   : > { %1381 = vmatprep.subr.bf16.mxu0 (!%p1346_p11), %v1477_v30  ;;  %1400 = vmatprep.subr.bf16.mxu1 (!%p1346_p11), %v1477_v30  ;;  %v1481_v36 = vld [vmem:[%s1735_s29 + $0x28] sm:$0xff] (!%p1346_p11)   ;;  %v732_v42 = vld [vmem:[#allocation3 + $0x40] sm:$0xff] (!%p1346_p11)  ;;  %v1484_v43 = vld [vmem:[%s1735_s29 + $0x18] sm:$0xff] (!%p1346_p11)  }
  0x77   : > { %757 = vperm.xlu1 (!%p1346_p11), %1475, %v727_v28   ;;  %747 = vperm.xlu0 (!%p1346_p11), %1474, %v725_v29   ;;  %v733_v41 = vld [vmem:[#allocation3 + $0x48] sm:$0xff] (!%p1346_p11)  ;;  %v1485_v44 = vld [vmem:[%s1735_s29 + $0x38] sm:$0xff] (!%p1346_p11)   ;;  %v734_v46 = vld [vmem:[#allocation3 + $0x50] sm:$0xff] (!%p1346_p11) }
  0x78   : > { %1383 = vmatprep.mubr.msk.bf16.mxu0 (!%p1346_p11), %vm602_vm1, %v1478_v31  ;;  %1391 = vmatprep.mubr.msk.bf16.mxu1 (!%p1346_p11), %vm602_vm1, %v1479_v34  ;;  %v735_v45 = vld [vmem:[#allocation3 + $0x58] sm:$0xff] (!%p1346_p11)  ;;  %v737_v47 = vld [vmem:[#allocation3 + $0x68] sm:$0xff] (!%p1346_p11)  ;;  %v736_v48 = vld [vmem:[#allocation3 + $0x60] sm:$0xff] (!%p1346_p11) }
  0x79   : > { %1382 = vmatpush3.bf16.msra.mxu0 %v1477_v30  ;;  %1402 = vmatpush3.bf16.msra.mxu1 %v1477_v30  ;;  %v739_v49 = vld [vmem:[#allocation3 + $0x78] sm:$0xff]  ;;  %v738_v50 = vld [vmem:[#allocation3 + $0x70] sm:$0xff]  ;;  %v843_v51 = vld [vmem:[#allocation4 + $0x8] sm:$0xff]  ;;  %s1083_s11 = scalar_select %p1082_p12, 1.0, 2.0 }
  0x7a   : > { %v842_v52 = vld [vmem:[#allocation4] sm:$0xff]  ;;  %v845_v53 = vld [vmem:[#allocation4 + $0x18] sm:$0xff]  ;;  %v844_v54 = vld [vmem:[#allocation4 + $0x10] sm:$0xff] }
  0x7b   : > { %767 = vperm.xlu1 %1475, %v729_v32   ;;  %762 = vperm.xlu0 %1474, %v728_v33   ;;  %v847_v55 = vld [vmem:[#allocation4 + $0x28] sm:$0xff]  ;;  %v846_v56 = vld [vmem:[#allocation4 + $0x20] sm:$0xff]  ;;  %v849_v57 = vld [vmem:[#allocation4 + $0x38] sm:$0xff] }
  0x7c   : > { %1384 = vmatmul.mubr.msk.bf16.vlgmr.msra.gmra.mrb[0].mxu0 %vm602_vm1, %v1480_v35  ;;  %1392 = vmatmul.mubr.msk.bf16.vlgmr.msra.gmra.mrb[0].mxu1 %vm602_vm1, %v1481_v36  ;;  %v848_v58 = vld [vmem:[#allocation4 + $0x30] sm:$0xff]  ;;  %v851_v59 = vld [vmem:[#allocation4 + $0x48] sm:$0xff]  ;;  %v850_v60 = vld [vmem:[#allocation4 + $0x40] sm:$0xff] }
  0x7d   : > { %1387 = vmatprep.mubr.msk.bf16.mxu0 %vm602_vm1, %v1482_v39  ;;  %1395 = vmatprep.mubr.msk.bf16.mxu1 %vm602_vm1, %v1483_v40  ;;  %v853_v61 = vld [vmem:[#allocation4 + $0x58] sm:$0xff]  ;;  %v852_v62 = vld [vmem:[#allocation4 + $0x50] sm:$0xff]  ;;  %v855_v63 = vld [vmem:[#allocation4 + $0x68] sm:$0xff] }
  0x7e   : > { %v854_v0 = vld [vmem:[#allocation4 + $0x60] sm:$0xff]  ;;  %v857_v1 = vld [vmem:[#allocation4 + $0x78] sm:$0xff]  ;;  %v856_v2 = vld [vmem:[#allocation4 + $0x70] sm:$0xff] }
  0x7f   : > { %777 = vperm.xlu1 %1475, %v731_v37   ;;  %772 = vperm.xlu0 %1474, %v730_v38   ;;  %v514_v3 = vld [vmem:[%s1730_s17 + $0x8] sm:$0xff]  ;;  %v513_v4 = vld [vmem:[%s1730_s17] sm:$0xff]  ;;  %v516_v5 = vld [vmem:[%s1730_s17 + $0x18] sm:$0xff] }
  0x80   : > { %v515_v6 = vld [vmem:[%s1730_s17 + $0x10] sm:$0xff]  ;;  %v518_v7 = vld [vmem:[%s1730_s17 + $0x28] sm:$0xff]  ;;  %v517_v8 = vld [vmem:[%s1730_s17 + $0x20] sm:$0xff] }
  0x81   : > { %v520_v9 = vld [vmem:[%s1730_s17 + $0x38] sm:$0xff]  ;;  %v519_v10 = vld [vmem:[%s1730_s17 + $0x30] sm:$0xff]  ;;  %v522_v12 = vld [vmem:[%s1730_s17 + $0x48] sm:$0xff] }
  0x82   : > { %v521_v13 = vld [vmem:[%s1730_s17 + $0x40] sm:$0xff]  ;;  %v524_v15 = vld [vmem:[%s1730_s17 + $0x58] sm:$0xff]  ;;  %v523_v16 = vld [vmem:[%s1730_s17 + $0x50] sm:$0xff] }
  0x83   : > { %787 = vperm.xlu1 %1475, %v733_v41   ;;  %782 = vperm.xlu0 %1474, %v732_v42   ;;  %v526_v17 = vld [vmem:[%s1730_s17 + $0x68] sm:$0xff]  ;;  %v525_v18 = vld [vmem:[%s1730_s17 + $0x60] sm:$0xff]  ;;  %v528_v19 = vld [vmem:[%s1730_s17 + $0x78] sm:$0xff] }
  0x84   : > { %1388 = vmatmul.mubr.msk.bf16.gmra.mrb[4].mxu0 %vm602_vm1, %v1484_v43  ;;  %1396 = vmatmul.mubr.msk.bf16.gmra.mrb[4].mxu1 %vm602_vm1, %v1485_v44  ;;  %v527_v20 = vld [vmem:[%s1730_s17 + $0x70] sm:$0xff] }
  0x87   : > { %797 = vperm.xlu1 %1475, %v735_v45   ;;  %792 = vperm.xlu0 %1474, %v734_v46  }
  0x8b   : > { %807 = vperm.xlu1 %1475, %v737_v47   ;;  %802 = vperm.xlu0 %1474, %v736_v48  }
  0x8f   : > { %817 = vperm.xlu1 %1475, %v739_v49   ;;  %812 = vperm.xlu0 %1474, %v738_v50  }
  0x93   : > { %865 = vperm.xlu1 %1475, %v843_v51   ;;  %860 = vperm.xlu0 %1474, %v842_v52  }
  0x97   : > { %875 = vperm.xlu1 %1475, %v845_v53   ;;  %870 = vperm.xlu0 %1474, %v844_v54   ;;  %v1947_v53 = vld [vmem:[%s349_s12] ss:$0 sm:$0xff] }
  0x9b   : > { %885 = vperm.xlu1 %1475, %v847_v55   ;;  %880 = vperm.xlu0 %1474, %v846_v56  }
  0x9f   : > { %895 = vperm.xlu1 %1475, %v849_v57   ;;  %890 = vperm.xlu0 %1474, %v848_v58  }
  0xa3   : > { %905 = vperm.xlu1 %1475, %v851_v59   ;;  %900 = vperm.xlu0 %1474, %v850_v60  }
  0xa7   : > { %915 = vperm.xlu1 %1475, %v853_v61   ;;  %910 = vperm.xlu0 %1474, %v852_v62  }
  0xab   : > { %925 = vperm.xlu1 %1475, %v855_v63   ;;  %920 = vperm.xlu0 %1474, %v854_v0  }
  0xaf   : > { %935 = vperm.xlu1 %1475, %v857_v1   ;;  %930 = vperm.xlu0 %1474, %v856_v2  }
  0xb3   : > { %961 = vperm.xlu1 %1475, %v514_v3   ;;  %956 = vperm.xlu0 %1474, %v513_v4  }
  0xb7   : > { %971 = vperm.xlu1 %1475, %v516_v5   ;;  %966 = vperm.xlu0 %1474, %v515_v6  }
  0xbb   : > { %981 = vperm.xlu1 %1475, %v518_v7   ;;  %976 = vperm.xlu0 %1474, %v517_v8  }
  0xbf   : > { %991 = vperm.xlu1 %1475, %v520_v9   ;;  %986 = vperm.xlu0 %1474, %v519_v10  }
  0xc3   : > { %1001 = vperm.xlu1 %1475, %v522_v12   ;;  %996 = vperm.xlu0 %1474, %v521_v13  }
  0xc7   : > { %1011 = vperm.xlu1 %1475, %v524_v15   ;;  %1006 = vperm.xlu0 %1474, %v523_v16  }
  0xcb   : > { %1021 = vperm.xlu1 %1475, %v526_v17   ;;  %1016 = vperm.xlu0 %1474, %v525_v18  }
  0xcf   : > { %1031 = vperm.xlu1 %1475, %v528_v19   ;;  %1026 = vperm.xlu0 %1474, %v527_v20  }
  0xf2   : > { %v753_v21 = vpop.permute.xlu1 %752  ;;  %v743_v22 = vpop.permute.xlu0 %742 }
  0xf3   : > { %v826_v57 = vmul.f32 %v1947_v53, %v743_v22  ;;  %v828_v60 = vmul.f32 %v1947_v53, %v753_v21 }
  0xf6   : > { %v758_v23 = vpop.permute.xlu1 %757  ;;  %v748_v24 = vpop.permute.xlu0 %747 }
  0xf7   : > { %v827_v54 = vmul.f32 %v1947_v53, %v748_v24  ;;  %v829_v58 = vmul.f32 %v1947_v53, %v758_v23 }
  0xfa   : > { %v768_v25 = vpop.permute.xlu1 %767  ;;  %v763_v11 = vpop.permute.xlu0 %762 }
  0xfb   : > { %v831_v62 = vmul.f32 %v1947_v53, %v768_v25  ;;  %v830_v13 = vmul.f32 %v1947_v53, %v763_v11 }
  0xfe   : > { %v778_v14 = vpop.permute.xlu1 %777  ;;  %v773_v26 = vpop.permute.xlu0 %772 }
  0xff   : > { %v833_v16 = vmul.f32 %v1947_v53, %v778_v14  ;;  %v832_v18 = vmul.f32 %v1947_v53, %v773_v26 }
 0x102   : > { %v788_v27 = vpop.permute.xlu1 %787  ;;  %v783_v28 = vpop.permute.xlu0 %782 }
 0x103   : > { %v835_v2 = vmul.f32 %v1947_v53, %v788_v27  ;;  %v834_v4 = vmul.f32 %v1947_v53, %v783_v28 }
 0x106   : > { %v798_v29 = vpop.permute.xlu1 %797  ;;  %v793_v30 = vpop.permute.xlu0 %792 }
 0x107   : > { %v836_v6 = vmul.f32 %v1947_v53, %v793_v30  ;;  %v837_v8 = vmul.f32 %v1947_v53, %v798_v29 }
 0x10a   : > { %v808_v31 = vpop.permute.xlu1 %807  ;;  %v1930_v32 = vpop.permute.xlu0 %802 }
 0x10b   : > { %v839_v20 = vmul.f32 %v1947_v53, %v808_v31  ;;  %v838_v25 = vmul.f32 %v1947_v53, %v1930_v32 }
 0x10e   : > { %v1932_v33 = vpop.permute.xlu1 %817  ;;  %v1934_v34 = vpop.permute.xlu0 %812 }
 0x10f   : > { %v840_v14 = vmul.f32 %v1947_v53, %v1934_v34  ;;  %v841_v27 = vmul.f32 %v1947_v53, %v1932_v33 }
 0x112   : > { %v866_v35 = vpop.permute.xlu1 %865  ;;  %v861_v36 = vpop.permute.xlu0 %860 }
 0x113   : > { %v939_v59 = vadd.f32 %v866_v35, %v827_v54  ;;  %v938_v61 = vadd.f32 %v861_v36, %v826_v57 }
 0x115   : > { %1486 = vrcp.f32 %v939_v59 }
 0x116   : > { %v876_v37 = vpop.permute.xlu1 %875  ;;  %v871_v38 = vpop.permute.xlu0 %870  ;;  %1488 = vrcp.f32 %v938_v61 }
 0x117   : > { %v941_v63 = vadd.f32 %v876_v37, %v829_v58  ;;  %v940_v3 = vadd.f32 %v871_v38, %v828_v60 }
 0x119   : > { %1490 = vrcp.f32 %v941_v63 }
 0x11a   : > { %v886_v39 = vpop.permute.xlu1 %885  ;;  %v881_v40 = vpop.permute.xlu0 %880  ;;  %1492 = vrcp.f32 %v940_v3 }
 0x11b   : > { %v943_v5 = vadd.f32 %v886_v39, %v831_v62  ;;  %v942_v19 = vadd.f32 %v881_v40, %v830_v13 }
 0x11d   : > { %1494 = vrcp.f32 %v943_v5 }
 0x11e   : > { %v896_v41 = vpop.permute.xlu1 %895  ;;  %v891_v42 = vpop.permute.xlu0 %890 }
 0x11f   : > { %v945_v21 = vadd.f32 %v896_v41, %v833_v16  ;;  %v944_v24 = vadd.f32 %v891_v42, %v832_v18  ;;  %v1487_v26 = vpop.eup %1486  ;;  %v1086_v18 = vld [vmem:[#allocation2 + $0x10] sm:$0xff] }
 0x120   : > { %v1489_v31 = vpop.eup %1488 }
 0x122   : > { %v906_v43 = vpop.permute.xlu1 %905  ;;  %v901_v44 = vpop.permute.xlu0 %900 }
 0x123   : > { %v947_v7 = vadd.f32 %v906_v43, %v835_v2  ;;  %v946_v9 = vadd.f32 %v901_v44, %v834_v4  ;;  %v1491_v35 = vpop.eup %1490 }
 0x124   : > { %v1493_v37 = vpop.eup %1492 }
 0x125   : > { %1496 = vrcp.f32 %v947_v7 }
 0x126   : > { %v916_v45 = vpop.permute.xlu1 %915  ;;  %v911_v46 = vpop.permute.xlu0 %910  ;;  %1498 = vrcp.f32 %v946_v9 }
 0x127   : > { %v948_v15 = vadd.f32 %v911_v46, %v836_v6  ;;  %v949_v17 = vadd.f32 %v916_v45, %v837_v8  ;;  %v1988_v40 = vpop.eup %1494 }
 0x129   : > { %1500 = vrcp.f32 %v948_v15 }
 0x12a   : > { %v926_v47 = vpop.permute.xlu1 %925  ;;  %v921_v48 = vpop.permute.xlu0 %920  ;;  %1502 = vrcp.f32 %v949_v17 }
 0x12b   : > { %v951_v11 = vadd.f32 %v926_v47, %v839_v20  ;;  %1504 = vrcp.f32 %v942_v19  ;;  %v950_v28 = vadd.f32 %v921_v48, %v838_v25  ;;  %v1094_v19 = vld [vmem:[#allocation2 + $0x50] sm:$0xff] }
 0x12c   : > { %1506 = vrcp.f32 %v945_v21 }
 0x12d   : > { %1508 = vrcp.f32 %v944_v24 }
 0x12e   : > { %v1936_v49 = vpop.permute.xlu1 %935  ;;  %v931_v50 = vpop.permute.xlu0 %930  ;;  %1510 = vrcp.f32 %v951_v11 }
 0x12f   : > { %v952_v32 = vadd.f32 %v931_v50, %v840_v14  ;;  %v953_v36 = vadd.f32 %v1936_v49, %v841_v27  ;;  %1512 = vrcp.f32 %v950_v28  ;;  %v1497_v44 = vpop.eup %1496  ;;  %v1994_v49 = vstv %s1083_s11  ;;  %v1084_v14 = vld [vmem:[#allocation2] sm:$0xff] }
 0x130   : > { %v1499_v48 = vpop.eup %1498 }
 0x131   : > { %1514 = vrcp.f32 %v952_v32  ;;  %v1087_v32 = vld [vmem:[#allocation2 + $0x18] sm:$0xff] }
 0x132   : > { %v1938_v51 = vpop.permute.xlu1 %961  ;;  %v1940_v52 = vpop.permute.xlu0 %956  ;;  %1516 = vrcp.f32 %v953_v36 }
 0x133   : > { %v1035_v34 = vmul.f32 %v1947_v53, %v1938_v51  ;;  %v1034_v33 = vmul.f32 %v1947_v53, %v1940_v52  ;;  %v1501_v50 = vpop.eup %1500 }
 0x135   : > { %v1066_v52 = vmul.f32 %v1489_v31, %v1034_v33 }
 0x136   : > { %v972_v55 = vpop.permute.xlu1 %971  ;;  %v967_v56 = vpop.permute.xlu0 %966 }
 0x137   : > { %v1037_v38 = vmul.f32 %v1947_v53, %v972_v55  ;;  %v1036_v39 = vmul.f32 %v1947_v53, %v967_v56  ;;  %v1067_v55 = vmul.f32 %v1487_v26, %v1035_v34  ;;  %v1503_v56 = vpop.eup %1502  ;;  %v1092_v26 = vld [vmem:[#allocation2 + $0x40] sm:$0xff] }
 0x138   : > { %v2008_v63 = vpop.eup %1504 }
 0x139   : > { %v1068_v51 = vmul.f32 %v1493_v37, %v1036_v39  ;;  %v1069_v54 = vmul.f32 %v1491_v35, %v1037_v38  ;;  %v2012_v7 = vpop.eup %1506  ;;  %v1095_v35 = vld [vmem:[#allocation2 + $0x58] sm:$0xff] }
 0x13a   : > { %v1954_v0 = vpop.permute.xlu1 %981  ;;  %v1956_v1 = vpop.permute.xlu0 %976 }
 0x13b   : > { %v1998_v57 = vmul.f32 %v1947_v53, %v1954_v0  ;;  %v2002_v58 = vmul.f32 %v1947_v53, %v1956_v1  ;;  %v1509_v16 = vpop.eup %1508 }
 0x13c   : > { %v1511_v24 = vpop.eup %1510 }
 0x13d   : > { %v1513_v34 = vpop.eup %1512 }
 0x13e   : > { %v1962_v10 = vpop.permute.xlu1 %991  ;;  %v1964_v12 = vpop.permute.xlu0 %986 }
 0x13f   : > { %v2006_v59 = vmul.f32 %v1947_v53, %v1962_v10  ;;  %v1040_v2 = vmul.f32 %v1947_v53, %v1964_v12 }
 0x142   : > { %v1002_v22 = vpop.permute.xlu1 %1001  ;;  %v997_v23 = vpop.permute.xlu0 %996 }
 0x143   : > { %v1043_v45 = vmul.f32 %v1947_v53, %v1002_v22  ;;  %v1042_v46 = vmul.f32 %v1947_v53, %v997_v23 }
 0x145   : > { %v1074_v0 = vmul.f32 %v1499_v48, %v1042_v46  ;;  %v1075_v6 = vmul.f32 %v1497_v44, %v1043_v45  ;;  %v1515_v44 = vpop.eup %1514 }
 0x146   : > { %v1012_v29 = vpop.permute.xlu1 %1011  ;;  %v1007_v30 = vpop.permute.xlu0 %1006 }
 0x147   : > { %v1044_v41 = vmul.f32 %v1947_v53, %v1007_v30  ;;  %v1045_v47 = vmul.f32 %v1947_v53, %v1012_v29 }
 0x149   : > { %v1076_v62 = vmul.f32 %v1501_v50, %v1044_v41  ;;  %v1077_v5 = vmul.f32 %v1503_v56, %v1045_v47  ;;  %v1517_v50 = vpop.eup %1516 }
 0x14a   : > { %v1022_v42 = vpop.permute.xlu1 %1021  ;;  %v1017_v43 = vpop.permute.xlu0 %1016 }
 0x14b   : > { %v2015_v1 = vmul.f32 %v1947_v53, %v1022_v42  ;;  %v1046_v8 = vmul.f32 %v1947_v53, %v1017_v43  ;;  %v1085_v42 = vld [vmem:[#allocation2 + $0x8] sm:$0xff] }
 0x14c   : > { %v1093_v43 = vld [vmem:[#allocation2 + $0x48] sm:$0xff] }
 0x14e   : > { %v1032_v60 = vpop.permute.xlu1 %1031  ;;  %v1027_v61 = vpop.permute.xlu0 %1026 }
 0x14f   : > { %v1385_v3 = vpop.f32.mrb[0].mxu0  ;;  %v1393_v4 = vpop.f32.mrb[0].mxu1  ;;  %v1049_v17 = vmul.f32 %v1947_v53, %v1032_v60  ;;  %v1048_v12 = vmul.f32 %v1947_v53, %v1027_v61 }
 0x150   : > { %v1102_v9 = vmul.f32 %v1385_v3, %v1068_v51  ;;  %v1110_v10 = vmul.f32 %v1393_v4, %v1076_v62  ;;  %v661_v13 = vpop.f32.mrb[1].mxu0  ;;  %v693_v15 = vpop.f32.mrb[1].mxu1  ;;  %v1070_v3 = vmul.f32 %v2008_v63, %v2002_v58  ;;  %v1078_v4 = vmul.f32 %v1513_v34, %v1046_v8 }
 0x151   : > { %v1100_v20 = vmul.f32 %v1066_v52, %v661_v13  ;;  %v1108_v21 = vmul.f32 %v1074_v0, %v693_v15  ;;  %v1386_v22 = vpop.f32.mrb[2].mxu0  ;;  %v1394_v23 = vpop.f32.mrb[2].mxu1  ;;  %v1090_v13 = vld [vmem:[#allocation2 + $0x30] sm:$0xff]  ;;  %v1071_v58 = vmul.f32 %v1988_v40, %v1998_v57  ;;  %v1079_v63 = vmul.f32 %v1511_v24, %v2015_v1 }
 0x152   : > { %v1119_v25 = vmul.f32 %v1994_v49, %v1102_v9  ;;  %v1127_v11 = vmul.f32 %v1994_v49, %v1110_v10  ;;  %v1103_v27 = vmul.f32 %v1386_v22, %v1069_v54  ;;  %v1111_v28 = vmul.f32 %v1394_v23, %v1077_v5  ;;  %v664_v29 = vpop.f32.mrb[3].mxu0  ;;  %v696_v30 = vpop.f32.mrb[3].mxu1  ;;  %v1098_v15 = vld [vmem:[#allocation2 + $0x70] sm:$0xff] }
 0x153   : > { %v1117_v31 = vmul.f32 %v1994_v49, %v1100_v20  ;;  %v1125_v53 = vmul.f32 %v1994_v49, %v1108_v21  ;;  %v1101_v36 = vmul.f32 %v1067_v55, %v664_v29  ;;  %v1109_v37 = vmul.f32 %v1075_v6, %v696_v30  ;;  %v1088_v21 = vld [vmem:[#allocation2 + $0x20] sm:$0xff]  ;;  %v1089_v29 = vld [vmem:[#allocation2 + $0x28] sm:$0xff] }
 0x154   : > { %v1135_v33 = vadd.f32 %v1119_v25, %v1086_v18  ;;  %v1143_v38 = vadd.f32 %v1127_v11, %v1094_v19  ;;  %v1120_v39 = vmul.f32 %v1994_v49, %v1103_v27  ;;  %v1128_v41 = vmul.f32 %v1994_v49, %v1111_v28  ;;  %v1097_v30 = vld [vmem:[#allocation2 + $0x68] sm:$0xff] }
 0x155   : > { %v1133_v45 = vadd.f32 %v1117_v31, %v1084_v14  ;;  %v1141_v46 = vadd.f32 %v1125_v53, %v1092_v26  ;;  %v1118_v47 = vmul.f32 %v1994_v49, %v1101_v36  ;;  %v1126_v48 = vmul.f32 %v1994_v49, %v1109_v37  ;;  %v1091_v14 = vld [vmem:[#allocation2 + $0x38] sm:$0xff] }
 0x156   : > { %1151 = vst [vmem:[#allocation2 + $0x10] sm:$0xff] %v1135_v33  ;;  %1159 = vst [vmem:[#allocation2 + $0x50] sm:$0xff] %v1143_v38  ;;  %v1136_v51 = vadd.f32 %v1120_v39, %v1087_v32  ;;  %v1144_v52 = vadd.f32 %v1128_v41, %v1095_v35  ;;  %v1072_v54 = vmul.f32 %v1509_v16, %v1040_v2  ;;  %v1099_v26 = vld [vmem:[#allocation2 + $0x78] sm:$0xff] }
 0x157   : > { %v1080_v55 = vmul.f32 %v1515_v44, %v1048_v12  ;;  %1149 = vst [vmem:[#allocation2] sm:$0xff] %v1133_v45  ;;  %1157 = vst [vmem:[#allocation2 + $0x40] sm:$0xff] %v1141_v46  ;;  %v1134_v56 = vadd.f32 %v1118_v47, %v1085_v42  ;;  %v1142_v60 = vadd.f32 %v1126_v48, %v1093_v43  ;;  %v1389_v61 = vpop.f32.mrb[4].mxu0  ;;  %v1397_v62 = vpop.f32.mrb[4].mxu1 }
 0x158   : > { %1152 = vst [vmem:[#allocation2 + $0x18] sm:$0xff] %v1136_v51  ;;  %1160 = vst [vmem:[#allocation2 + $0x58] sm:$0xff] %v1144_v52  ;;  %v1106_v0 = vmul.f32 %v1389_v61, %v1072_v54  ;;  %v677_v6 = vpop.f32.mrb[5].mxu0  ;;  %v709_v9 = vpop.f32.mrb[5].mxu1  ;;  %v1073_v2 = vmul.f32 %v2012_v7, %v2006_v59  ;;  %v1081_v10 = vmul.f32 %v1517_v50, %v1049_v17  ;;  %v1096_v59 = vld [vmem:[#allocation2 + $0x60] sm:$0xff] }
 0x159   : > { %v1114_v5 = vmul.f32 %v1397_v62, %v1080_v55  ;;  %1150 = vst [vmem:[#allocation2 + $0x8] sm:$0xff] %v1134_v56  ;;  %1158 = vst [vmem:[#allocation2 + $0x48] sm:$0xff] %v1142_v60  ;;  %v1104_v16 = vmul.f32 %v1070_v3, %v677_v6  ;;  %v1112_v12 = vmul.f32 %v1078_v4, %v709_v9  ;;  %v1390_v18 = vpop.f32.mrb[6].mxu0  ;;  %v1398_v19 = vpop.f32.mrb[6].mxu1 }
 0x15a   : > { %v1123_v8 = vmul.f32 %v1994_v49, %v1106_v0  ;;  %v1107_v7 = vmul.f32 %v1390_v18, %v1073_v2  ;;  %v1115_v17 = vmul.f32 %v1398_v19, %v1081_v10  ;;  %v680_v22 = vpop.f32.mrb[7].mxu0  ;;  %v712_v23 = vpop.f32.mrb[7].mxu1 }
 0x15b   : > { %v1131_v20 = vmul.f32 %v1994_v49, %v1114_v5  ;;  %v1121_v25 = vmul.f32 %v1994_v49, %v1104_v16  ;;  %v1129_v11 = vmul.f32 %v1994_v49, %v1112_v12  ;;  %v1105_v27 = vmul.f32 %v1071_v58, %v680_v22 }
 0x15c   : > { %v1113_v40 = vmul.f32 %v1079_v63, %v712_v23  ;;  %v1139_v57 = vadd.f32 %v1123_v8, %v1090_v13  ;;  %v1124_v24 = vmul.f32 %v1994_v49, %v1107_v7  ;;  %v1132_v28 = vmul.f32 %v1994_v49, %v1115_v17 }
 0x15d   : > { %v1147_v1 = vadd.f32 %v1131_v20, %v1098_v15  ;;  %v1137_v31 = vadd.f32 %v1121_v25, %v1088_v21  ;;  %v1145_v53 = vadd.f32 %v1129_v11, %v1096_v59  ;;  %v1122_v32 = vmul.f32 %v1994_v49, %v1105_v27 }
 0x15e   : > { %v1130_v35 = vmul.f32 %v1994_v49, %v1113_v40  ;;  %1155 = vst [vmem:[#allocation2 + $0x30] sm:$0xff] %v1139_v57  ;;  %v1140_v36 = vadd.f32 %v1124_v24, %v1091_v14  ;;  %v1148_v37 = vadd.f32 %v1132_v28, %v1099_v26 }
 0x15f   : > { %1163 = vst [vmem:[#allocation2 + $0x70] sm:$0xff] %v1147_v1  ;;  %1153 = vst [vmem:[#allocation2 + $0x20] sm:$0xff] %v1137_v31  ;;  %v1138_v34 = vadd.f32 %v1122_v32, %v1089_v29 }
 0x160   : > { %1161 = vst [vmem:[#allocation2 + $0x60] sm:$0xff] %v1145_v53  ;;  %v1146_v33 = vadd.f32 %v1130_v35, %v1097_v30  ;;  %1156 = vst [vmem:[#allocation2 + $0x38] sm:$0xff] %v1140_v36 }
 0x161   : > { %1164 = vst [vmem:[#allocation2 + $0x78] sm:$0xff] %v1148_v37  ;;  %1154 = vst [vmem:[#allocation2 + $0x28] sm:$0xff] %v1138_v34 }
 0x162   : > { %1162 = vst [vmem:[#allocation2 + $0x68] sm:$0xff] %v1146_v33 }
 0x163 PF: > { %p1366_p13 = scmp.ne.s32.totalorder %s1575_s20, 1 }
 0x164   : > { %v1169_v38 = vld [vmem:[#allocation2] sm:$0xff] (!%p1366_p13)  ;;  %v1170_v39 = vld [vmem:[#allocation2 + $0x8] sm:$0xff] (!%p1366_p13)  ;;  %v1171_v41 = vld [vmem:[#allocation2 + $0x10] sm:$0xff] (!%p1366_p13) }
 0x165   : > { %1168 = sbr.rel (%p1366_p13) target bundleno = 593 (0x251), region = 97  ;;  %v1185_v49 = vadd.f32 (!%p1366_p13), %v1170_v39, %v1169_v38  ;;  %v1172_v42 = vld [vmem:[#allocation2 + $0x18] sm:$0xff] (!%p1366_p13)  ;;  %v1175_v48 = vld [vmem:[#allocation2 + $0x30] sm:$0xff] (!%p1366_p13)  ;;  %v1177_v54 = vld [vmem:[#allocation2 + $0x40] sm:$0xff] (!%p1366_p13) }
 0x166   : > { %v1173_v44 = vld [vmem:[#allocation2 + $0x20] sm:$0xff] (!%p1366_p13)  ;;  %v1178_v56 = vld [vmem:[#allocation2 + $0x48] sm:$0xff] (!%p1366_p13)  ;;  %v1179_v61 = vld [vmem:[#allocation2 + $0x50] sm:$0xff] (!%p1366_p13) }
 0x167   : > { %v1186_v43 = vadd.f32 (!%p1366_p13), %v1185_v49, %v1171_v41  ;;  %v1176_v51 = vld [vmem:[#allocation2 + $0x38] sm:$0xff] (!%p1366_p13)  ;;  %v1181_v0 = vld [vmem:[#allocation2 + $0x60] sm:$0xff] (!%p1366_p13)  ;;  %v1183_v2 = vld [vmem:[#allocation2 + $0x70] sm:$0xff] (!%p1366_p13) }
 0x168   : > { %v1174_v46 = vld [vmem:[#allocation2 + $0x28] sm:$0xff] (!%p1366_p13)  ;;  %v1180_v3 = vld [vmem:[#allocation2 + $0x58] sm:$0xff] (!%p1366_p13) }
 0x169   : > { %v1187_v45 = vadd.f32 (!%p1366_p13), %v1186_v43, %v1172_v42  ;;  %v1182_v6 = vld [vmem:[#allocation2 + $0x68] sm:$0xff] (!%p1366_p13)  ;;  %v1184_v13 = vld [vmem:[#allocation2 + $0x78] sm:$0xff] (!%p1366_p13) }
 0x16b   : > { %v1188_v47 = vadd.f32 (!%p1366_p13), %v1187_v45, %v1173_v44 }
 0x16d   : > { %v1189_v50 = vadd.f32 %v1188_v47, %v1174_v46 }
 0x16f   : > { %v1190_v52 = vadd.f32 %v1189_v50, %v1175_v48 }
 0x171   : > { %v1191_v55 = vadd.f32 %v1190_v52, %v1176_v51 }
 0x173   : > { %v1192_v60 = vadd.f32 %v1191_v55, %v1177_v54 }
 0x175   : > { %v1193_v62 = vadd.f32 %v1192_v60, %v1178_v56 }
 0x177   : > { %v1194_v4 = vadd.f32 %v1193_v62, %v1179_v61 }
 0x179   : > { %v1195_v5 = vadd.f32 %v1194_v4, %v1180_v3 }
 0x17b   : > { %v1196_v9 = vadd.f32 %v1195_v5, %v1181_v0 }
 0x17d   : > { %v1197_v10 = vadd.f32 %v1196_v9, %v1182_v6 }
 0x17f   : > { %v1198_v15 = vadd.f32 %v1197_v10, %v1183_v2 }
 0x181   : > { %v1199_v16 = vadd.f32 %v1198_v15, %v1184_v13 }
 0x183   : > { %1200 = vadd.xlane.f32.xlu0 %v1199_v16 }
 0x210   : > { %v1201_v12 = vpop.xlane.xlu0 %1200 }
 0x211   : > { %v1202_v18 = vrot.slane %v1201_v12, 4 }
 0x213   : > { %v1203_v19 = vadd.f32 %v1202_v18, %v1201_v12 }
 0x215   : > { %v1204_v58 = vrot.slane %v1203_v19, 2 }
 0x217   : > { %v1205_v63 = vadd.f32 %v1204_v58, %v1203_v19 }
 0x219   : > { %v1206_v8 = vrot.slane %v1205_v63, 1 }
 0x21b   : > { %v1207_v20 = vadd.f32 %v1206_v8, %v1205_v63 }
 0x21d   : > { %1403 = vpush %v1207_v20 }
 0x24e   : > { %s1404_s20 = spop %1403 }
 0x24f   : > { %v1209_v21 = vstv %s1404_s20 }
 0x250   : > { %1210 = vst [vmem:[%s1741_s27] sm:$0xff] %v1209_v21 }
 0x251 PF: > { %s16_s24 = sadd.s32 1, %s1591_s24   ;;  %s2082_s12 = sld [smem:[#allocation9_spill]] }
 0x252   : > { %p13_p0 = scmp.ge.s32.totalorder %s16_s24, 6   ;;  %s2083_s18 = smov %s1571_s19 }
 0x253   : > { %s2084_s19 = smov %s1681_s6  ;;  %s2085_s20 = smov %s1583_s22 }
 0x254   : > { %s2086_s21 = smov %s1587_s23  ;;  %s2087_s22 = smov %s2090_s26 }
 0x255   :  { %15 = sbr.rel (!%p13_p0) target bundleno = 7 (0x7), region = 142 }
 0x257   : > { %s2088_s23 = smov %s2082_s12 }
 0x25c   :  { %1230 = vsyncpa [#allocation6], 1 }
 0x25d   :  { %1232 = vsyncpa [#allocation6 + $0x1], 1 }

</bundles_post_ra>
